<compile_context>
chip_gen: v6e
topology: v6e:2x2x1
jax: 0.10.0
libtpu: 0.0.40
codegen_flags: <defaults>
</compile_context>

<pallas_src>
from functools import partial

import jax
import jax.numpy as jnp
from jax.experimental import pallas as pl
from jax.experimental.pallas import tpu as pltpu


def _decoder_layer_kernel(x_ref, wq_ref, bq_ref, wk_ref, bk_ref, wv_ref, bv_ref,
                          wo_ref, bo_ref, w1_ref, b1_ref, w2_ref, b2_ref,
                          g1_ref, be1_ref, g2_ref, be2_ref, o_ref, *, num_heads):
    N, L, E = x_ref.shape
    H = num_heads
    hd = E // H
    M = N * L
    f32, bf16 = jnp.float32, jnp.bfloat16

    # Whole-batch activation slab; leading-dim collapse only (no lane relayout).
    x = x_ref[...].reshape(M, E)                       # (M, E) f32, kept for residuals
    x_bf = x.astype(bf16)

    # Q/K/V projections from pre-split, pre-transposed (E, E) weights.
    # 1/sqrt(hd) is already folded into wq/bq, so scores need no extra scaling.
    q = jnp.dot(x_bf, wq_ref[...], preferred_element_type=f32) + bq_ref[...]
    k = jnp.dot(x_bf, wk_ref[...], preferred_element_type=f32) + bk_ref[...]
    v = jnp.dot(x_bf, wv_ref[...], preferred_element_type=f32) + bv_ref[...]

    # Self-attention: head-batched einsums, statically unrolled over the (tiny) batch.
    # TODO(synk): attn_mask / attention dropout not implemented (module runs mask=None,
    # MultiheadAttention default dropout=0).
    attn_blocks = []
    for n in range(N):                                  # static unroll (N=2)
        rows = slice(n * L, (n + 1) * L)                # sublane-tile-aligned row slice
        qb = q[rows].reshape(L, H, hd).astype(bf16)
        kb = k[rows].reshape(L, H, hd).astype(bf16)
        vb = v[rows].reshape(L, H, hd).astype(bf16)

        s = jnp.einsum("qhd,khd->hqk", qb, kb, preferred_element_type=f32)  # (H, L, L)
        s = s - jnp.max(s, axis=-1, keepdims=True)
        p = jnp.exp(s)
        p = p * pl.reciprocal(jnp.sum(p, axis=-1, keepdims=True), approx=True)

        ab = jnp.einsum("hqk,khd->qhd", p.astype(bf16), vb,
                        preferred_element_type=f32).reshape(L, E)           # (L, E)
        attn_blocks.append(ab)
    attn = jnp.concatenate(attn_blocks, axis=0)         # (M, E), tile-aligned concat

    # Output projection (wo pre-transposed to (E, E)).
    attn = jnp.dot(attn.astype(bf16), wo_ref[...], preferred_element_type=f32) + bo_ref[...]

    def layer_norm(y, g, b):
        mu = jnp.mean(y, axis=-1, keepdims=True)
        var = jnp.mean((y - mu) ** 2, axis=-1, keepdims=True)
        return (y - mu) * jax.lax.rsqrt(var + 1e-5) * g + b

    # Residual + norm1 (f32).
    x1 = layer_norm(x + attn, g1_ref[...], be1_ref[...])

    # FFN: Linear -> ReLU -> Linear (w1: (E, d_ff), w2: (d_ff, E), pre-transposed).
    h = jnp.dot(x1.astype(bf16), w1_ref[...], preferred_element_type=f32) + b1_ref[...]
    h = jnp.maximum(h, 0.0)
    h = jnp.dot(h.astype(bf16), w2_ref[...], preferred_element_type=f32) + b2_ref[...]

    # Residual + norm2, stored as one contiguous (N, L, E) slab.
    out = layer_norm(x1 + h, g2_ref[...], be2_ref[...])
    o_ref[...] = out.reshape(N, L, E)


def prepare_decoder_params(params, num_heads):
    """One-time prep: split QKV, transpose to x@W orientation, fold 1/sqrt(hd), cast bf16."""
    E = params["wo"].shape[0]
    hd = E // num_heads
    scale = 1.0 / float(hd) ** 0.5
    bf16, f32 = jnp.bfloat16, jnp.float32
    wqkv, bqkv = params["wqkv"], params["bqkv"]         # (3E, E), (1, 3E)
    return (
        (wqkv[:E].T * scale).astype(bf16),              # wq (E, E), scale folded
        (bqkv[:, :E] * scale).astype(f32),              # bq (1, E), scale folded
        wqkv[E:2 * E].T.astype(bf16),                   # wk
        bqkv[:, E:2 * E].astype(f32),                   # bk
        wqkv[2 * E:].T.astype(bf16),                    # wv
        bqkv[:, 2 * E:].astype(f32),                    # bv
        params["wo"].T.astype(bf16), params["bo"].astype(f32),
        params["w1"].T.astype(bf16), params["b1"].astype(f32),   # (E, d_ff), (1, d_ff)
        params["w2"].T.astype(bf16), params["b2"].astype(f32),   # (d_ff, E), (1, E)
        params["g1"].astype(f32), params["be1"].astype(f32),
        params["g2"].astype(f32), params["be2"].astype(f32),
    )


@partial(jax.jit, static_argnames=("num_heads",))
def transformer_decoder_layer(x_lne, prepared, *, num_heads):
    """x_lne: (L, N, E) — PyTorch MultiheadAttention default layout. Returns (L, N, E)."""
    L, N, E = x_lne.shape
    # Layout plumbing only: present one contiguous (N, L, E) slab to the kernel.
    x_nle = jnp.transpose(x_lne, (1, 0, 2)).astype(jnp.float32)

    kernel = partial(_decoder_layer_kernel, num_heads=num_heads)
    vmem_spec = pl.BlockSpec(memory_space=pltpu.MemorySpace.VMEM)

    out = pl.pallas_call(
        kernel,
        out_shape=jax.ShapeDtypeStruct((N, L, E), jnp.float32),
        in_specs=[vmem_spec] * (1 + len(prepared)),
        out_specs=vmem_spec,
    )(x_nle, *prepared)

    return jnp.transpose(out, (1, 0, 2))                # back to (L, N, E)


def _reference(x_lne, params, num_heads):
    """Pure-JAX f32 reference matching PyTorch TransformerDecoderLayer.forward (mask=None)."""
    L, N, E = x_lne.shape
    hd = E // num_heads
    x = jnp.transpose(x_lne, (1, 0, 2)).astype(jnp.float32)  # (N, L, E)

    qkv = jnp.einsum("nle,fe->nlf", x, params["wqkv"]) + params["bqkv"][0]
    q, k, v = jnp.split(qkv, 3, axis=-1)

    def split_heads(t):
        return t.reshape(N, L, num_heads, hd).transpose(0, 2, 1, 3)

    qh, kh, vh = map(split_heads, (q, k, v))
    s = jnp.einsum("nhqd,nhkd->nhqk", qh, kh) / jnp.sqrt(jnp.float32(hd))
    p = jax.nn.softmax(s, axis=-1)
    a = jnp.einsum("nhqk,nhkd->nhqd", p, vh).transpose(0, 2, 1, 3).reshape(N, L, E)
    a = a @ params["wo"].T + params["bo"][0]

    def ln(y, g, b):
        mu = y.mean(-1, keepdims=True)
        var = ((y - mu) ** 2).mean(-1, keepdims=True)
        return (y - mu) / jnp.sqrt(var + 1e-5) * g + b

    x1 = ln(x + a, params["g1"][0], params["be1"][0])
    h = jax.nn.relu(x1 @ params["w1"].T + params["b1"][0])
    h = h @ params["w2"].T + params["b2"][0]
    out = ln(x1 + h, params["g2"][0], params["be2"][0])
    return jnp.transpose(out, (1, 0, 2))


def _init_params(key, d_model, d_ff):
    ks = jax.random.split(key, 8)
    std = 0.05
    f32 = jnp.float32
    return {
        "wqkv": jax.random.normal(ks[0], (3 * d_model, d_model), f32) * std,
        "bqkv": jax.random.normal(ks[1], (1, 3 * d_model), f32) * std,
        "wo":   jax.random.normal(ks[2], (d_model, d_model), f32) * std,
        "bo":   jax.random.normal(ks[3], (1, d_model), f32) * std,
        "w1":   jax.random.normal(ks[4], (d_ff, d_model), f32) * std,
        "b1":   jax.random.normal(ks[5], (1, d_ff), f32) * std,
        "w2":   jax.random.normal(ks[6], (d_model, d_ff), f32) * std,
        "b2":   jax.random.normal(ks[7], (1, d_model), f32) * std,
        # LayerNorm affine params: PyTorch init (ones / zeros).
        "g1":  jnp.ones((1, d_model), f32),
        "be1": jnp.zeros((1, d_model), f32),
        "g2":  jnp.ones((1, d_model), f32),
        "be2": jnp.zeros((1, d_model), f32),
    }


if __name__ == "__main__":
    d_model, num_heads, d_ff = 32, 4, 64
    L, N = 8, 2  # (seq, batch)

    key = jax.random.PRNGKey(0)
    k_x, k_p = jax.random.split(key)
    x = jax.random.normal(k_x, (L, N, d_model), jnp.float32)
    params = _init_params(k_p, d_model, d_ff)

    # One-time parameter prep (hoisted out of the per-call forward).
    prepared = jax.tree_util.tree_map(jax.block_until_ready,
                                      prepare_decoder_params(params, num_heads))

    out = transformer_decoder_layer(x, prepared, num_heads=num_heads)
    out = jax.block_until_ready(out)

    ref = _reference(x, params, num_heads)
    assert out.shape == (L, N, d_model)
    max_err = float(jnp.max(jnp.abs(out - ref)))
    # bf16 MXU operands + approx softmax reciprocal -> slightly looser than pure f32.
    assert jnp.allclose(out, ref, atol=2e-2, rtol=2e-2), (
        f"mismatch vs pure-JAX reference (max abs err {max_err:.3e})")

    print("KERNEL_OK")
</pallas_src>

<mosaic_0001>
module attributes {stable_mosaic.version = 11 : i64} {
  func.func @_decoder_layer_kernel(%arg0: memref<2x8x32xf32, #tpu.memory_space<vmem>>, %arg1: memref<32x32xbf16, #tpu.memory_space<vmem>>, %arg2: memref<1x32xf32, #tpu.memory_space<vmem>>, %arg3: memref<32x32xbf16, #tpu.memory_space<vmem>>, %arg4: memref<1x32xf32, #tpu.memory_space<vmem>>, %arg5: memref<32x32xbf16, #tpu.memory_space<vmem>>, %arg6: memref<1x32xf32, #tpu.memory_space<vmem>>, %arg7: memref<32x32xbf16, #tpu.memory_space<vmem>>, %arg8: memref<1x32xf32, #tpu.memory_space<vmem>>, %arg9: memref<32x64xbf16, #tpu.memory_space<vmem>>, %arg10: memref<1x64xf32, #tpu.memory_space<vmem>>, %arg11: memref<64x32xbf16, #tpu.memory_space<vmem>>, %arg12: memref<1x32xf32, #tpu.memory_space<vmem>>, %arg13: memref<1x32xf32, #tpu.memory_space<vmem>>, %arg14: memref<1x32xf32, #tpu.memory_space<vmem>>, %arg15: memref<1x32xf32, #tpu.memory_space<vmem>>, %arg16: memref<1x32xf32, #tpu.memory_space<vmem>>, %arg17: memref<2x8x32xf32, #tpu.memory_space<vmem>>) attributes {dimension_semantics = [], scalar_prefetch = 0 : i64, scratch_operands = 0 : i64, tpu.core_type = #tpu.core_type<tc>} {
    %c0 = arith.constant 0 : index
    %c0_0 = arith.constant 0 : index
    %c0_1 = arith.constant 0 : index
    %0 = vector.load %arg0[%c0, %c0_0, %c0_1] : memref<2x8x32xf32, #tpu.memory_space<vmem>>, vector<2x8x32xf32>
    %1 = vector.shape_cast %0 : vector<2x8x32xf32> to vector<16x32xf32>
    %2 = arith.truncf %1 : vector<16x32xf32> to vector<16x32xbf16>
    %c0_2 = arith.constant 0 : index
    %c0_3 = arith.constant 0 : index
    %3 = vector.load %arg1[%c0_2, %c0_3] : memref<32x32xbf16, #tpu.memory_space<vmem>>, vector<32x32xbf16>
    %cst = arith.constant dense<0.000000e+00> : vector<16x32xf32>
    %4 = tpu.matmul %2, %3, %cst {dimension_numbers = #tpu.dot_dimension_numbers<[1], [0], [0], [1], [0, 0, 1, 1], [], []>} : vector<16x32xbf16>, vector<32x32xbf16>, vector<16x32xf32> -> vector<16x32xf32>
    %c0_4 = arith.constant 0 : index
    %c0_5 = arith.constant 0 : index
    %5 = vector.load %arg2[%c0_4, %c0_5] : memref<1x32xf32, #tpu.memory_space<vmem>>, vector<1x32xf32>
    %6 = vector.broadcast %5 : vector<1x32xf32> to vector<16x32xf32>
    %7 = arith.addf %4, %6 : vector<16x32xf32>
    %c0_6 = arith.constant 0 : index
    %c0_7 = arith.constant 0 : index
    %8 = vector.load %arg3[%c0_6, %c0_7] : memref<32x32xbf16, #tpu.memory_space<vmem>>, vector<32x32xbf16>
    %cst_8 = arith.constant dense<0.000000e+00> : vector<16x32xf32>
    %9 = tpu.matmul %2, %8, %cst_8 {dimension_numbers = #tpu.dot_dimension_numbers<[1], [0], [0], [1], [0, 0, 1, 1], [], []>} : vector<16x32xbf16>, vector<32x32xbf16>, vector<16x32xf32> -> vector<16x32xf32>
    %c0_9 = arith.constant 0 : index
    %c0_10 = arith.constant 0 : index
    %10 = vector.load %arg4[%c0_9, %c0_10] : memref<1x32xf32, #tpu.memory_space<vmem>>, vector<1x32xf32>
    %11 = vector.broadcast %10 : vector<1x32xf32> to vector<16x32xf32>
    %12 = arith.addf %9, %11 : vector<16x32xf32>
    %c0_11 = arith.constant 0 : index
    %c0_12 = arith.constant 0 : index
    %13 = vector.load %arg5[%c0_11, %c0_12] : memref<32x32xbf16, #tpu.memory_space<vmem>>, vector<32x32xbf16>
    %cst_13 = arith.constant dense<0.000000e+00> : vector<16x32xf32>
    %14 = tpu.matmul %2, %13, %cst_13 {dimension_numbers = #tpu.dot_dimension_numbers<[1], [0], [0], [1], [0, 0, 1, 1], [], []>} : vector<16x32xbf16>, vector<32x32xbf16>, vector<16x32xf32> -> vector<16x32xf32>
    %c0_14 = arith.constant 0 : index
    %c0_15 = arith.constant 0 : index
    %15 = vector.load %arg6[%c0_14, %c0_15] : memref<1x32xf32, #tpu.memory_space<vmem>>, vector<1x32xf32>
    %16 = vector.broadcast %15 : vector<1x32xf32> to vector<16x32xf32>
    %17 = arith.addf %14, %16 : vector<16x32xf32>
    %18 = vector.extract_strided_slice %7 {offsets = [0, 0], sizes = [8, 32], strides = [1, 1]} : vector<16x32xf32> to vector<8x32xf32>
    %19 = vector.shape_cast %18 : vector<8x32xf32> to vector<8x4x8xf32>
    %20 = arith.truncf %19 : vector<8x4x8xf32> to vector<8x4x8xbf16>
    %21 = vector.extract_strided_slice %12 {offsets = [0, 0], sizes = [8, 32], strides = [1, 1]} : vector<16x32xf32> to vector<8x32xf32>
    %22 = vector.shape_cast %21 : vector<8x32xf32> to vector<8x4x8xf32>
    %23 = arith.truncf %22 : vector<8x4x8xf32> to vector<8x4x8xbf16>
    %24 = vector.extract_strided_slice %17 {offsets = [0, 0], sizes = [8, 32], strides = [1, 1]} : vector<16x32xf32> to vector<8x32xf32>
    %25 = vector.shape_cast %24 : vector<8x32xf32> to vector<8x4x8xf32>
    %26 = arith.truncf %25 : vector<8x4x8xf32> to vector<8x4x8xbf16>
    "tpu.trace_start"() <{level = 10 : i32, message = "qhd,khd->hqk"}> : () -> ()
    %cst_16 = arith.constant dense<0.000000e+00> : vector<4x8x8xf32>
    %27 = tpu.matmul %20, %23, %cst_16 {dimension_numbers = #tpu.dot_dimension_numbers<[2], [2], [0], [0], [0, 1, 0, 0, 1, 0], [1], [1]>} : vector<8x4x8xbf16>, vector<8x4x8xbf16>, vector<4x8x8xf32> -> vector<4x8x8xf32>
    "tpu.trace_stop"() : () -> ()
    %cst_17 = arith.constant dense<0xFF800000> : vector<4x8xf32>
    %28 = vector.multi_reduction <maximumf>, %27, %cst_17 [2] : vector<4x8x8xf32> to vector<4x8xf32>
    %29 = vector.shape_cast %28 : vector<4x8xf32> to vector<4x8x1xf32>
    %30 = vector.broadcast %29 : vector<4x8x1xf32> to vector<4x8x8xf32>
    %31 = arith.subf %27, %30 : vector<4x8x8xf32>
    %32 = math.exp %31 : vector<4x8x8xf32>
    %cst_18 = arith.constant dense<0.000000e+00> : vector<4x8xf32>
    %33 = vector.multi_reduction <add>, %32, %cst_18 [2] : vector<4x8x8xf32> to vector<4x8xf32>
    %34 = vector.shape_cast %33 : vector<4x8xf32> to vector<4x8x1xf32>
    %35 = tpu.reciprocal %34 {approx = true} : vector<4x8x1xf32> -> vector<4x8x1xf32>
    %36 = vector.broadcast %35 : vector<4x8x1xf32> to vector<4x8x8xf32>
    %37 = arith.mulf %32, %36 : vector<4x8x8xf32>
    %38 = arith.truncf %37 : vector<4x8x8xf32> to vector<4x8x8xbf16>
    "tpu.trace_start"() <{level = 10 : i32, message = "hqk,khd->qhd"}> : () -> ()
    %cst_19 = arith.constant dense<0.000000e+00> : vector<4x8x8xf32>
    %39 = tpu.matmul %26, %38, %cst_19 {dimension_numbers = #tpu.dot_dimension_numbers<[0], [2], [2], [1], [0, 1, 0, 2, 1, 1], [1], [0]>} : vector<8x4x8xbf16>, vector<4x8x8xbf16>, vector<4x8x8xf32> -> vector<4x8x8xf32>
    %40 = tpu.transpose %39, [2, 0, 1] : vector<4x8x8xf32> -> vector<8x4x8xf32>
    "tpu.trace_stop"() : () -> ()
    %41 = vector.shape_cast %40 : vector<8x4x8xf32> to vector<8x32xf32>
    %42 = vector.extract_strided_slice %7 {offsets = [8, 0], sizes = [8, 32], strides = [1, 1]} : vector<16x32xf32> to vector<8x32xf32>
    %43 = vector.shape_cast %42 : vector<8x32xf32> to vector<8x4x8xf32>
    %44 = arith.truncf %43 : vector<8x4x8xf32> to vector<8x4x8xbf16>
    %45 = vector.extract_strided_slice %12 {offsets = [8, 0], sizes = [8, 32], strides = [1, 1]} : vector<16x32xf32> to vector<8x32xf32>
    %46 = vector.shape_cast %45 : vector<8x32xf32> to vector<8x4x8xf32>
    %47 = arith.truncf %46 : vector<8x4x8xf32> to vector<8x4x8xbf16>
    %48 = vector.extract_strided_slice %17 {offsets = [8, 0], sizes = [8, 32], strides = [1, 1]} : vector<16x32xf32> to vector<8x32xf32>
    %49 = vector.shape_cast %48 : vector<8x32xf32> to vector<8x4x8xf32>
    %50 = arith.truncf %49 : vector<8x4x8xf32> to vector<8x4x8xbf16>
    "tpu.trace_start"() <{level = 10 : i32, message = "qhd,khd->hqk"}> : () -> ()
    %cst_20 = arith.constant dense<0.000000e+00> : vector<4x8x8xf32>
    %51 = tpu.matmul %44, %47, %cst_20 {dimension_numbers = #tpu.dot_dimension_numbers<[2], [2], [0], [0], [0, 1, 0, 0, 1, 0], [1], [1]>} : vector<8x4x8xbf16>, vector<8x4x8xbf16>, vector<4x8x8xf32> -> vector<4x8x8xf32>
    "tpu.trace_stop"() : () -> ()
    %cst_21 = arith.constant dense<0xFF800000> : vector<4x8xf32>
    %52 = vector.multi_reduction <maximumf>, %51, %cst_21 [2] : vector<4x8x8xf32> to vector<4x8xf32>
    %53 = vector.shape_cast %52 : vector<4x8xf32> to vector<4x8x1xf32>
    %54 = vector.broadcast %53 : vector<4x8x1xf32> to vector<4x8x8xf32>
    %55 = arith.subf %51, %54 : vector<4x8x8xf32>
    %56 = math.exp %55 : vector<4x8x8xf32>
    %cst_22 = arith.constant dense<0.000000e+00> : vector<4x8xf32>
    %57 = vector.multi_reduction <add>, %56, %cst_22 [2] : vector<4x8x8xf32> to vector<4x8xf32>
    %58 = vector.shape_cast %57 : vector<4x8xf32> to vector<4x8x1xf32>
    %59 = tpu.reciprocal %58 {approx = true} : vector<4x8x1xf32> -> vector<4x8x1xf32>
    %60 = vector.broadcast %59 : vector<4x8x1xf32> to vector<4x8x8xf32>
    %61 = arith.mulf %56, %60 : vector<4x8x8xf32>
    %62 = arith.truncf %61 : vector<4x8x8xf32> to vector<4x8x8xbf16>
    "tpu.trace_start"() <{level = 10 : i32, message = "hqk,khd->qhd"}> : () -> ()
    %cst_23 = arith.constant dense<0.000000e+00> : vector<4x8x8xf32>
    %63 = tpu.matmul %50, %62, %cst_23 {dimension_numbers = #tpu.dot_dimension_numbers<[0], [2], [2], [1], [0, 1, 0, 2, 1, 1], [1], [0]>} : vector<8x4x8xbf16>, vector<4x8x8xbf16>, vector<4x8x8xf32> -> vector<4x8x8xf32>
    %64 = tpu.transpose %63, [2, 0, 1] : vector<4x8x8xf32> -> vector<8x4x8xf32>
    "tpu.trace_stop"() : () -> ()
    %65 = vector.shape_cast %64 : vector<8x4x8xf32> to vector<8x32xf32>
    %66 = tpu.concatenate %41, %65 in 0 : vector<8x32xf32>, vector<8x32xf32> -> vector<16x32xf32>
    %67 = arith.truncf %66 : vector<16x32xf32> to vector<16x32xbf16>
    %c0_24 = arith.constant 0 : index
    %c0_25 = arith.constant 0 : index
    %68 = vector.load %arg7[%c0_24, %c0_25] : memref<32x32xbf16, #tpu.memory_space<vmem>>, vector<32x32xbf16>
    %cst_26 = arith.constant dense<0.000000e+00> : vector<16x32xf32>
    %69 = tpu.matmul %67, %68, %cst_26 {dimension_numbers = #tpu.dot_dimension_numbers<[1], [0], [0], [1], [0, 0, 1, 1], [], []>} : vector<16x32xbf16>, vector<32x32xbf16>, vector<16x32xf32> -> vector<16x32xf32>
    %c0_27 = arith.constant 0 : index
    %c0_28 = arith.constant 0 : index
    %70 = vector.load %arg8[%c0_27, %c0_28] : memref<1x32xf32, #tpu.memory_space<vmem>>, vector<1x32xf32>
    %71 = vector.broadcast %70 : vector<1x32xf32> to vector<16x32xf32>
    %72 = arith.addf %69, %71 : vector<16x32xf32>
    %73 = arith.addf %1, %72 : vector<16x32xf32>
    %c0_29 = arith.constant 0 : index
    %c0_30 = arith.constant 0 : index
    %74 = vector.load %arg13[%c0_29, %c0_30] : memref<1x32xf32, #tpu.memory_space<vmem>>, vector<1x32xf32>
    %c0_31 = arith.constant 0 : index
    %c0_32 = arith.constant 0 : index
    %75 = vector.load %arg14[%c0_31, %c0_32] : memref<1x32xf32, #tpu.memory_space<vmem>>, vector<1x32xf32>
    %cst_33 = arith.constant dense<0.000000e+00> : vector<16xf32>
    %76 = vector.multi_reduction <add>, %73, %cst_33 [1] : vector<16x32xf32> to vector<16xf32>
    %77 = vector.shape_cast %76 : vector<16xf32> to vector<16x1xf32>
    %cst_34 = arith.constant 3.200000e+01 : f32
    %78 = vector.broadcast %cst_34 : f32 to vector<16x1xf32>
    %79 = arith.divf %77, %78 : vector<16x1xf32>
    %80 = vector.broadcast %79 : vector<16x1xf32> to vector<16x32xf32>
    %81 = arith.subf %73, %80 : vector<16x32xf32>
    %82 = arith.mulf %81, %81 : vector<16x32xf32>
    %cst_35 = arith.constant dense<0.000000e+00> : vector<16xf32>
    %83 = vector.multi_reduction <add>, %82, %cst_35 [1] : vector<16x32xf32> to vector<16xf32>
    %84 = vector.shape_cast %83 : vector<16xf32> to vector<16x1xf32>
    %cst_36 = arith.constant 3.200000e+01 : f32
    %85 = vector.broadcast %cst_36 : f32 to vector<16x1xf32>
    %86 = arith.divf %84, %85 : vector<16x1xf32>
    %87 = vector.broadcast %79 : vector<16x1xf32> to vector<16x32xf32>
    %88 = arith.subf %73, %87 : vector<16x32xf32>
    %cst_37 = arith.constant 9.99999974E-6 : f32
    %89 = vector.broadcast %cst_37 : f32 to vector<16x1xf32>
    %90 = arith.addf %86, %89 : vector<16x1xf32>
    %91 = math.rsqrt %90 : vector<16x1xf32>
    %92 = vector.broadcast %91 : vector<16x1xf32> to vector<16x32xf32>
    %93 = arith.mulf %88, %92 : vector<16x32xf32>
    %94 = vector.broadcast %74 : vector<1x32xf32> to vector<16x32xf32>
    %95 = arith.mulf %93, %94 : vector<16x32xf32>
    %96 = vector.broadcast %75 : vector<1x32xf32> to vector<16x32xf32>
    %97 = arith.addf %95, %96 : vector<16x32xf32>
    %98 = arith.truncf %97 : vector<16x32xf32> to vector<16x32xbf16>
    %c0_38 = arith.constant 0 : index
    %c0_39 = arith.constant 0 : index
    %99 = vector.load %arg9[%c0_38, %c0_39] : memref<32x64xbf16, #tpu.memory_space<vmem>>, vector<32x64xbf16>
    %cst_40 = arith.constant dense<0.000000e+00> : vector<16x64xf32>
    %100 = tpu.matmul %98, %99, %cst_40 {dimension_numbers = #tpu.dot_dimension_numbers<[1], [0], [0], [1], [0, 0, 1, 1], [], []>} : vector<16x32xbf16>, vector<32x64xbf16>, vector<16x64xf32> -> vector<16x64xf32>
    %c0_41 = arith.constant 0 : index
    %c0_42 = arith.constant 0 : index
    %101 = vector.load %arg10[%c0_41, %c0_42] : memref<1x64xf32, #tpu.memory_space<vmem>>, vector<1x64xf32>
    %102 = vector.broadcast %101 : vector<1x64xf32> to vector<16x64xf32>
    %103 = arith.addf %100, %102 : vector<16x64xf32>
    %cst_43 = arith.constant 0.000000e+00 : f32
    %104 = vector.broadcast %cst_43 : f32 to vector<16x64xf32>
    %105 = arith.maximumf %103, %104 : vector<16x64xf32>
    %106 = arith.truncf %105 : vector<16x64xf32> to vector<16x64xbf16>
    %c0_44 = arith.constant 0 : index
    %c0_45 = arith.constant 0 : index
    %107 = vector.load %arg11[%c0_44, %c0_45] : memref<64x32xbf16, #tpu.memory_space<vmem>>, vector<64x32xbf16>
    %cst_46 = arith.constant dense<0.000000e+00> : vector<16x32xf32>
    %108 = tpu.matmul %106, %107, %cst_46 {dimension_numbers = #tpu.dot_dimension_numbers<[1], [0], [0], [1], [0, 0, 1, 1], [], []>} : vector<16x64xbf16>, vector<64x32xbf16>, vector<16x32xf32> -> vector<16x32xf32>
    %c0_47 = arith.constant 0 : index
    %c0_48 = arith.constant 0 : index
    %109 = vector.load %arg12[%c0_47, %c0_48] : memref<1x32xf32, #tpu.memory_space<vmem>>, vector<1x32xf32>
    %110 = vector.broadcast %109 : vector<1x32xf32> to vector<16x32xf32>
    %111 = arith.addf %108, %110 : vector<16x32xf32>
    %112 = arith.addf %97, %111 : vector<16x32xf32>
    %c0_49 = arith.constant 0 : index
    %c0_50 = arith.constant 0 : index
    %113 = vector.load %arg15[%c0_49, %c0_50] : memref<1x32xf32, #tpu.memory_space<vmem>>, vector<1x32xf32>
    %c0_51 = arith.constant 0 : index
    %c0_52 = arith.constant 0 : index
    %114 = vector.load %arg16[%c0_51, %c0_52] : memref<1x32xf32, #tpu.memory_space<vmem>>, vector<1x32xf32>
    %cst_53 = arith.constant dense<0.000000e+00> : vector<16xf32>
    %115 = vector.multi_reduction <add>, %112, %cst_53 [1] : vector<16x32xf32> to vector<16xf32>
    %116 = vector.shape_cast %115 : vector<16xf32> to vector<16x1xf32>
    %cst_54 = arith.constant 3.200000e+01 : f32
    %117 = vector.broadcast %cst_54 : f32 to vector<16x1xf32>
    %118 = arith.divf %116, %117 : vector<16x1xf32>
    %119 = vector.broadcast %118 : vector<16x1xf32> to vector<16x32xf32>
    %120 = arith.subf %112, %119 : vector<16x32xf32>
    %121 = arith.mulf %120, %120 : vector<16x32xf32>
    %cst_55 = arith.constant dense<0.000000e+00> : vector<16xf32>
    %122 = vector.multi_reduction <add>, %121, %cst_55 [1] : vector<16x32xf32> to vector<16xf32>
    %123 = vector.shape_cast %122 : vector<16xf32> to vector<16x1xf32>
    %cst_56 = arith.constant 3.200000e+01 : f32
    %124 = vector.broadcast %cst_56 : f32 to vector<16x1xf32>
    %125 = arith.divf %123, %124 : vector<16x1xf32>
    %126 = vector.broadcast %118 : vector<16x1xf32> to vector<16x32xf32>
    %127 = arith.subf %112, %126 : vector<16x32xf32>
    %cst_57 = arith.constant 9.99999974E-6 : f32
    %128 = vector.broadcast %cst_57 : f32 to vector<16x1xf32>
    %129 = arith.addf %125, %128 : vector<16x1xf32>
    %130 = math.rsqrt %129 : vector<16x1xf32>
    %131 = vector.broadcast %130 : vector<16x1xf32> to vector<16x32xf32>
    %132 = arith.mulf %127, %131 : vector<16x32xf32>
    %133 = vector.broadcast %113 : vector<1x32xf32> to vector<16x32xf32>
    %134 = arith.mulf %132, %133 : vector<16x32xf32>
    %135 = vector.broadcast %114 : vector<1x32xf32> to vector<16x32xf32>
    %136 = arith.addf %134, %135 : vector<16x32xf32>
    %137 = vector.shape_cast %136 : vector<16x32xf32> to vector<2x8x32xf32>
    %c0_58 = arith.constant 0 : index
    %c0_59 = arith.constant 0 : index
    %c0_60 = arith.constant 0 : index
    %138 = vector.load %arg17[%c0_58, %c0_59, %c0_60] : memref<2x8x32xf32, #tpu.memory_space<vmem>>, vector<2x8x32xf32>
    tpu.vector_store %arg17[%c0_58, %c0_59, %c0_60], %137 {strides = array<i32>} : memref<2x8x32xf32, #tpu.memory_space<vmem>>, vector<2x8x32xf32>,
    return
  }
}

</mosaic_0001>

<bundles_post_ra>
// kernel: transformer_decoder_layer.1
= control target key start
LH: loop header
LB: loop body
LE: loop exit
PB: predicated region body
PF: predicated region fallthrough
CT: control target
= control target key end

     0   :  { %s5483_s0 = inlined_call_operand.vmem [shape: f32[2,8,32], index: 0, kind: input, shape index: {}]   ;;  %s5484_s1 = inlined_call_operand.vmem [shape: bf16[32,32], index: 1, kind: input, shape index: {}]   ;;  %s5485_s2 = inlined_call_operand.hbm [shape: f32[1,32], index: 2, kind: input, shape index: {}]   ;;  %s5486_s3 = inlined_call_operand.vmem [shape: bf16[32,32], index: 3, kind: input, shape index: {}]   ;;  %s5487_s4 = inlined_call_operand.hbm [shape: f32[1,32], index: 4, kind: input, shape index: {}]   ;;  %s5488_s5 = inlined_call_operand.vmem [shape: bf16[32,32], index: 5, kind: input, shape index: {}]   ;;  %s5489_s6 = inlined_call_operand.hbm [shape: f32[1,32], index: 6, kind: input, shape index: {}]   ;;  %s5490_s7 = inlined_call_operand.vmem [shape: bf16[32,32], index: 7, kind: input, shape index: {}]   ;;  %s5491_s8 = inlined_call_operand.hbm [shape: f32[1,32], index: 8, kind: input, shape index: {}]   ;;  %s5492_s9 = inlined_call_operand.vmem [shape: bf16[32,64], index: 9, kind: input, shape index: {}]   ;;  %s5493_s10 = inlined_call_operand.vmem [shape: f32[1,64], index: 10, kind: input, shape index: {}]   ;;  %s5494_s11 = inlined_call_operand.vmem [shape: bf16[64,32], index: 11, kind: input, shape index: {}]   ;;  %s5495_s12 = inlined_call_operand.vmem [shape: f32[1,32], index: 12, kind: input, shape index: {}]   ;;  %s5496_s13 = inlined_call_operand.vmem [shape: f32[1,32], index: 13, kind: input, shape index: {}]   ;;  %s5497_s14 = inlined_call_operand.vmem [shape: f32[1,32], index: 14, kind: input, shape index: {}]   ;;  %s5498_s15 = inlined_call_operand.vmem [shape: f32[1,32], index: 15, kind: input, shape index: {}]   ;;  %s5499_s16 = inlined_call_operand.vmem [shape: f32[1,32], index: 16, kind: input, shape index: {}]   ;;  %s5500_s17 = inlined_call_operand.vmem [shape: f32[2,8,32], index: 17, kind: output, shape index: {}]  }
   0x1   :  { %5503 = sst [smem:[#allocation12_spill]] %s5483_s0 }
   0x2   :  { %5504 = sst [smem:[#allocation13_spill]] %s5484_s1 }
   0x3   :  { %22 = vsyncpa [#allocation3], 0 }
   0x4   :  { %23 = vsyncpa [#allocation5], 0 }
   0x5   :  { %24 = vsyncpa [#allocation8], 0  ;;  %s4764_s24 = smov [#allocation4]   ;;  %s4765_s26 = smov [#allocation2]  }
   0x6   :  { %s47_s25 = sshll.u32 %s4764_s24, 4  ;;  %s35_s27 = sshll.u32 %s4765_s26, 4  ;;  %s48_s25 = int_to_ptr.vmem [resolvable:$true] %s47_s25  ;;  %s36_s27 = int_to_ptr.vmem [resolvable:$true] %s35_s27 }
   0x7   :  { %s4686_s28 = scalar_lea.vmem %s48_s25, 16  ;;  %s4690_s29 = scalar_lea.vmem %s48_s25, 32 }
   0x8   :  { %p4687_p0 = scmp.ne.s32.totalorder %s48_s25, %s4686_s28  ;;  %p4691_p1 = scmp.lt.s32.totalorder %s48_s25, %s48_s25 }
   0x9   :  { %p4692_p2 = scmp.lt.s32.totalorder %s4690_s29, %s4686_s28 }
   0xb   :  { %p4693_p3 = por %p4692_p2, %p4691_p1 }
   0xd   :  { %p4694_p4 = pnand %p4693_p3, %p4687_p0 }
   0xf   :  { %4697 = shalt.err (!%p4694_p4)
}
  0x10   :  { %50 = dma.hbm_to_vmem [thread:$0]  %s5487_s4, 16, %s48_s25, [#allocation5]  }
  0x11   :  { %s4706_s18 = scalar_lea.vmem %s36_s27, 16  ;;  %s4710_s19 = scalar_lea.vmem %s36_s27, 32 }
  0x12   :  { %p4707_p5 = scmp.ne.s32.totalorder %s36_s27, %s4706_s18  ;;  %p4711_p6 = scmp.lt.s32.totalorder %s36_s27, %s36_s27 }
  0x13   :  { %p4712_p7 = scmp.lt.s32.totalorder %s4710_s19, %s4706_s18 }
  0x15   :  { %p4713_p8 = por %p4712_p7, %p4711_p6 }
  0x17   :  { %p4714_p9 = pnand %p4713_p8, %p4707_p5 }
  0x19   :  { %4717 = shalt.err (!%p4714_p9)
}
  0x1a   :  { %38 = dma.hbm_to_vmem [thread:$0]  %s5485_s2, 16, %s36_s27, [#allocation3]  }
  0x1b   :  { %s4766_s21 = smov [#allocation6]   ;;  %s4767_s23 = smov [#allocation7]  }
  0x1c   :  { %s59_s22 = sshll.u32 %s4766_s21, 4  ;;  %s71_s24 = sshll.u32 %s4767_s23, 4  ;;  %s60_s22 = int_to_ptr.vmem [resolvable:$true] %s59_s22  ;;  %s72_s24 = int_to_ptr.vmem [resolvable:$true] %s71_s24 }
  0x1d   :  { %s4726_s26 = scalar_lea.vmem %s60_s22, 16  ;;  %s4730_s4 = scalar_lea.vmem %s60_s22, 32 }
  0x1e   :  { %p4727_p10 = scmp.ne.s32.totalorder %s60_s22, %s4726_s26  ;;  %p4731_p11 = scmp.lt.s32.totalorder %s60_s22, %s60_s22 }
  0x1f   :  { %p4732_p12 = scmp.lt.s32.totalorder %s4730_s4, %s4726_s26 }
  0x21   :  { %p4733_p13 = por %p4732_p12, %p4731_p11 }
  0x23   :  { %p4734_p0 = pnand %p4733_p13, %p4727_p10 }
  0x25   :  { %4737 = shalt.err (!%p4734_p0)
}
  0x26   :  { %62 = dma.hbm_to_vmem [thread:$0]  %s5489_s6, 16, %s60_s22, [#allocation5]  }
  0x27   :  { %s4746_s29 = scalar_lea.vmem %s72_s24, 16  ;;  %s4750_s2 = scalar_lea.vmem %s72_s24, 32 }
  0x28   :  { %p4747_p1 = scmp.ne.s32.totalorder %s72_s24, %s4746_s29  ;;  %p4751_p2 = scmp.lt.s32.totalorder %s72_s24, %s72_s24 }
  0x29   :  { %p4752_p3 = scmp.lt.s32.totalorder %s4750_s2, %s4746_s29 }
  0x2b   :  { %p4753_p4 = por %p4752_p3, %p4751_p2 }
  0x2d   :  { %p4754_p5 = pnand %p4753_p4, %p4747_p1 }
  0x2f   :  { %4757 = shalt.err (!%p4754_p5)
}
  0x30   :  { %74 = dma.hbm_to_vmem [thread:$0]  %s5491_s8, 16, %s72_s24, [#allocation8]  }
  0x31   :  { %4758 = dma.done.wait [#allocation3], 16  }
  0x32   :  { %4759 = vsyncadd [#allocation3], 4294967280 }
  0x33   :  { %4760 = dma.done.wait [#allocation5], 32  }
  0x34   :  { %4761 = vsyncadd [#allocation5], 4294967264 }
  0x35   :  { %4762 = dma.done.wait [#allocation8], 16  }
  0x36   :  { %4763 = vsyncadd [#allocation8], 4294967280  ;;  %v4768_v0 = vmov 0.0   ;;  %vm4769_vm0 = vmmov 0   ;;  %v4622_v1 = vld [vmem:[%s5486_s3 + $0x8] sm:$0xff]   ;;  %v4623_v2 = vld [vmem:[%s5486_s3] sm:$0xff]   ;;  %v318_v25 = vlaneseq }
  0x37   :  { %4452 = vmatprep.subr.bf16.mxu1 %v4768_v0  ;;  %4456 = vmatprep.mubr.msk.bf16.mxu1 %vm4769_vm0, %v4768_v0  ;;  %s5505_s20 = sld [smem:[#allocation12_spill]]  ;;  %vm130_vm1 = vcmask 261120   ;;  %v4626_v8 = vld [vmem:[%s5488_s5 + $0x8] sm:$0xff]   ;;  %v4627_v9 = vld [vmem:[%s5488_s5] sm:$0xff]   ;;  %s4770_s27 = smov 104   ;;  %vm1045_vm2 = vcmask 1043456  }
  0x38   :  { %4444 = vmatprep.subr.bf16.mxu0 %v4768_v0  ;;  %4448 = vmatprep.mubr.msk.bf16.mxu0 %vm4769_vm0, %v4768_v0  ;;  %s5506_s26 = sld [smem:[#allocation13_spill]]  ;;  %v4338_v10 = vld [vmem:[#allocation4] ss:$0 sm:$0xff]  ;;  %s4771_s0 = smov 120   ;;  %v4334_v19 = vld [vmem:[#allocation2] ss:$0 sm:$0xff] }
  0x39   :  { %4453 = vmatpush3.bf16.msra.mxu1 %v4622_v1  ;;  %s4772_s5 = smov 112   ;;  %v4773_v23 = vmov 1983009808   ;;  %v4774_v26 = vmov 1934713408   ;;  %v319_v29 = vshrl.u32 %v318_v25, 7 }
  0x3a   :  { %4454 = vmatprep.subr.bf16.mxu1 %v4768_v0  ;;  %v316_v24 = vunpack.c.l.s4 %v4773_v23  ;;  %v348_v27 = vunpack.c.l.s4 %v4774_v26  ;;  %vm1041_vm3 = vcmask 64512   ;;  %s4776_s19 = smov 16   ;;  %s4777_s1 = smov 8   ;;  %vm2154_vm4 = vcmask 130048  }
  0x3b   :  { %vm2156_vm5 = vcmask 195584   ;;  %vm4234_vm6 = vcmask 523264  }
  0x3c   :  { %v317_v28 = vunpack.c.0.s8 %v316_v24  ;;  %v349_v32 = vunpack.c.0.s8 %v348_v27 }
  0x3d   :  { %v104_v3 = vld [vmem:[%s5505_s20] sm:$0xff]  ;;  %v105_v4 = vld [vmem:[%s5505_s20 + $0x8] sm:$0xff]  ;;  %4455 = vmatpush3.bf16.msra.mxu1 %v4623_v2 }
  0x3e   :  { %v4624_v5 = vld [vmem:[%s5506_s26 + $0x8] sm:$0xff]   ;;  %v4625_v6 = vld [vmem:[%s5506_s26] sm:$0xff]   ;;  %v106_v7 = vpack.c.bf16 %v105_v4, %v104_v3  ;;  %4468 = vmatprep.subr.bf16.mxu1 %v4768_v0  ;;  %v4933_v33 = vsub.s32 %v317_v28, %v319_v29  ;;  %v4935_v39 = vsub.s32 %v349_v32, %v319_v29 }
  0x3f   :  { %4445 = vmatpush3.bf16.msra.mxu0 %v4624_v5  ;;  %v4342_v4 = vld [vmem:[#allocation6] ss:$0 sm:$0xff] }
  0x40   :  { %4446 = vmatprep.subr.bf16.mxu0 %v4768_v0  ;;  %4457 = vmatmul.mubr.msk.bf16.vlgmr.msra.gmra.mxu1 %vm130_vm1, %v106_v7 }
  0x41   :  { %4470 = vmatprep.mubr.msk.bf16.mxu1 %vm4769_vm0, %v4768_v0 }
  0x43   :  { %4447 = vmatpush3.bf16.msra.mxu0 %v4625_v6 }
  0x44   :  { %4460 = vmatprep.subr.bf16.mxu0 %v4768_v0 }
  0x46   :  { %4449 = vmatmul.mubr.msk.bf16.vlgmr.msra.gmra.mxu0 %vm130_vm1, %v106_v7 }
  0x47   :  { %4464 = vmatprep.mubr.msk.bf16.mxu0 %vm4769_vm0, %v4768_v0  ;;  %4461 = vmatpush3.bf16.msra.mxu0 %v4626_v8 }
  0x48   :  { %4462 = vmatprep.subr.bf16.mxu0 %v4768_v0 }
  0x4b   :  { %4463 = vmatpush3.bf16.msra.mxu0 %v4627_v9 }
  0x4c   :  { %4474 = vmatprep.subr.bf16.mxu0 %v4768_v0 }
  0x4e   :  { %4465 = vmatmul.mubr.msk.bf16.vlgmr.msra.gmra.mxu0 %vm130_vm1, %v106_v7 }
  0x4f   :  { %4476 = vmatprep.mubr.msk.bf16.mxu0 %vm4769_vm0, %v4768_v0 }
 0x100   :  { %v232_v11 = vpop.f32.mrf.mxu1 }
 0x101   :  { %v233_v12 = vadd.f32 %v4338_v10, %v232_v11 }
 0x102   :  { %v4458_v13 = vpop.f32.mrf.mxu1 }
 0x103   :  { %396 = vrot.lane.b32.xlu1 %v233_v12, %s4770_s27  ;;  %390 = vrot.lane.b32.xlu0 %v233_v12, %s4771_s0 }
 0x104   :  { %v235_v14 = vpop.f32.mrf.mxu1 }
 0x105   :  { %v4928_v15 = vadd.f32 %v4338_v10, %v235_v14 }
 0x106   :  { %v4459_v16 = vpop.f32.mrf.mxu1  ;;  %v168_v17 = vpop.f32.mrf.mxu0 }
 0x107   :  { %393 = vrot.lane.b32.xlu0 %v233_v12, %s4772_s5  ;;  %v4951_v3 = vadd.f32 %v4334_v19, %v168_v17 }
 0x108   :  { %v4450_v18 = vpop.f32.mrf.mxu0 }
 0x10a   :  { %v171_v20 = vpop.f32.mrf.mxu0 }
 0x10b   :  { %v4931_v21 = vadd.f32 %v4334_v19, %v171_v20 }
 0x10c   :  { %v4451_v22 = vpop.f32.mrf.mxu0 }
 0x10e   :  { %v4947_v58 = vpop.f32.mrf.mxu0 }
 0x110   :  { %v4466_v59 = vpop.f32.mrf.mxu0 }
 0x112   :  { %v299_v5 = vpop.f32.mrf.mxu0 }
 0x113   :  { %v4959_v6 = vadd.f32 %v4342_v4, %v299_v5 }
 0x114   :  { %v4467_v7 = vpop.f32.mrf.mxu0 }
 0x175   :  { %v397_v30 = vpop.permute.xlu1 %396  ;;  %v391_v31 = vpop.permute.xlu0 %390 }
 0x176   :  { %v415_v34 = vcombine.low %v391_v31, %v397_v30  ;;  %v416_v35 = vcombine.high %v391_v31, %v397_v30 }
 0x178   :  { %v423_v40 = vrot.slane %v415_v34, %v4933_v33  ;;  %v430_v41 = vrot.slane %v416_v35, %v4933_v33 }
 0x179   :  { %v394_v36 = vpop.permute.xlu0 %393 }
 0x17a   :  { %v399_v37 = vcombine.low %v233_v12, %v394_v36  ;;  %v400_v38 = vcombine.high %v233_v12, %v394_v36 }
 0x17c   :  { %v407_v42 = vrot.slane %v399_v37, %v4933_v33  ;;  %v414_v43 = vrot.slane %v400_v38, %v4933_v33  ;;  %v4775_v38 = vmov 0  }
 0x17e   :  { %v432_v44 = vcombine.high %v407_v42, %v423_v40  ;;  %v431_v45 = vcombine.low %v407_v42, %v423_v40  ;;  %v447_v46 = vcombine.low %v414_v43, %v430_v41  ;;  %v448_v49 = vcombine.high %v414_v43, %v430_v41 }
 0x180   :  { %v446_v47 = vrot.slane %v432_v44, %v4935_v39  ;;  %v439_v48 = vrot.slane %v431_v45, %v4935_v39  ;;  %v455_v52 = vrot.slane %v447_v46, %v4935_v39  ;;  %v462_v56 = vrot.slane %v448_v49, %v4935_v39 }
 0x182   :  { %v469_v50 = vpack.c.bf16 %v446_v47, %v446_v47  ;;  %v467_v51 = vpack.c.bf16 %v439_v48, %v439_v48  ;;  %v464_v53 = vcombine.high %v446_v47, %v4768_v0  ;;  %v471_v54 = vpack.c.bf16 %v455_v52, %v455_v52 }
 0x183   :  { %v465_v57 = vcombine.high %v455_v52, %v4768_v0  ;;  %v473_v60 = vpack.c.bf16 %v462_v56, %v462_v56  ;;  %v466_v62 = vcombine.high %v462_v56, %v4768_v0  ;;  %v463_v63 = vcombine.high %v439_v48, %v4768_v0 }
 0x184   :  { %655 = vxpose.xlu0.c.b16.start.end [1/1] (short) (narrow) %v469_v50, 16  ;;  %623 = vxpose.xlu1.c.b16.start.end [1/1] (short) (narrow) %v467_v51, 16  ;;  %v470_v55 = vpack.c.bf16 %v464_v53, %v464_v53  ;;  %v4974_v52 = vadd.f32 %v4342_v4, %v4947_v58 }
 0x185   :  { %v472_v61 = vpack.c.bf16 %v465_v57, %v465_v57  ;;  %v474_v1 = vpack.c.bf16 %v466_v62, %v466_v62  ;;  %v468_v2 = vpack.c.bf16 %v463_v63, %v463_v63 }
 0x188   :  { %687 = vxpose.xlu0.c.b16.start.end [1/1] (short) (narrow) %v471_v54, 16  ;;  %671 = vxpose.xlu1.c.b16.start.end [1/1] (short) (narrow) %v470_v55, 16 }
 0x18c   :  { %719 = vxpose.xlu0.c.b16.start.end [1/1] (short) (narrow) %v473_v60, 16  ;;  %703 = vxpose.xlu1.c.b16.start.end [1/1] (short) (narrow) %v472_v61, 16 }
 0x190   :  { %735 = vxpose.xlu1.c.b16.start.end [1/1] (short) (narrow) %v474_v1, 16  ;;  %639 = vxpose.xlu0.c.b16.start.end [1/1] (short) (narrow) %v468_v2, 16 }
 0x194   :  { %307 = vrot.lane.b32.xlu1 %v4951_v3, %s4772_s5 }
 0x198   :  { %310 = vrot.lane.b32.xlu1 %v4951_v3, %s4770_s27 }
 0x199   :  { %304 = vrot.lane.b32.xlu0 %v4951_v3, %s4771_s0 }
 0x1e6   :  { %v663_v8 = vpop.trf.xlu0  ;;  %v631_v9 = vpop.trf.xlu1 }
 0x1ea   :  { %v695_v10 = vpop.trf.xlu0  ;;  %v679_v11 = vpop.trf.xlu1 }
 0x1eb   :  { %v751_v14 = vcombine.low %v631_v9, %v695_v10 }
 0x1ed   :  { %v758_v20 = vrot.slane %v751_v14, %v4933_v33 }
 0x1ee   :  { %v727_v12 = vpop.trf.xlu0  ;;  %v711_v13 = vpop.trf.xlu1 }
 0x1ef   :  { %v759_v16 = vcombine.low %v663_v8, %v727_v12 }
 0x1f1   :  { %v766_v17 = vrot.slane %v759_v16, %v4933_v33 }
 0x1f2   :  { %v743_v18 = vpop.trf.xlu1  ;;  %v647_v19 = vpop.trf.xlu0 }
 0x1f3   :  { %v793_v22 = vcombine.low %v679_v11, %v743_v18  ;;  %v785_v23 = vcombine.low %v647_v19, %v711_v13  ;;  %v767_v24 = vcombine.low %v758_v20, %v766_v17  ;;  %v768_v25 = vcombine.high %v758_v20, %v766_v17 }
 0x1f5   :  { %v800_v26 = vrot.slane %v793_v22, %v4933_v33  ;;  %v792_v27 = vrot.slane %v785_v23, %v4933_v33  ;;  %v775_v30 = vrot.slane %v767_v24, %v4935_v39  ;;  %v782_v31 = vrot.slane %v768_v25, %v4935_v39 }
 0x1f7   :  { %v801_v28 = vcombine.low %v792_v27, %v800_v26  ;;  %v802_v29 = vcombine.high %v792_v27, %v800_v26  ;;  %v823_v41 = vshrl.u32 %v775_v30, 16  ;;  %v783_v42 = vcombine.high %v775_v30, %v4775_v38 }
 0x1f8   :  { %v784_v47 = vcombine.high %v782_v31, %v4775_v38  ;;  %v839_v48 = vshrl.u32 %v782_v31, 16 }
 0x1f9   :  { %v809_v32 = vrot.slane %v801_v28, %v4935_v39  ;;  %v816_v34 = vrot.slane %v802_v29, %v4935_v39  ;;  %v831_v53 = vshrl.u32 %v783_v42, 16 }
 0x1fa   :  { %v847_v56 = vshrl.u32 %v784_v47, 16 }
 0x1fb   :  { %v837_v35 = vpack.i.b16 %v816_v34, %v782_v31  ;;  %v821_v36 = vpack.i.b16 %v809_v32, %v775_v30  ;;  %v824_v37 = vshrl.u32 %v809_v32, 16  ;;  %v817_v40 = vcombine.high %v809_v32, %v4775_v38 }
 0x1fc   :  { %v818_v45 = vcombine.high %v816_v34, %v4775_v38  ;;  %v840_v46 = vshrl.u32 %v816_v34, 16 }
 0x1fd   :  { %915 = vxpose.xlu1.c.b16.start.end [1/1] (short) (narrow) %v837_v35, 16  ;;  %851 = vxpose.xlu0.c.b16.start.end [1/1] (short) (narrow) %v821_v36, 16  ;;  %v825_v43 = vpack.i.b16 %v824_v37, %v823_v41  ;;  %v829_v44 = vpack.i.b16 %v817_v40, %v783_v42  ;;  %v832_v51 = vshrl.u32 %v817_v40, 16 }
 0x1fe   :  { %v845_v49 = vpack.i.b16 %v818_v45, %v784_v47  ;;  %v841_v50 = vpack.i.b16 %v840_v46, %v839_v48  ;;  %v848_v55 = vshrl.u32 %v818_v45, 16 }
 0x1ff   :  { %v833_v54 = vpack.i.b16 %v832_v51, %v831_v53 }
 0x200   :  { %v849_v57 = vpack.i.b16 %v848_v55, %v847_v56 }
 0x201   :  { %867 = vxpose.xlu1.c.b16.start.end [1/1] (short) (narrow) %v825_v43, 16  ;;  %883 = vxpose.xlu0.c.b16.start.end [1/1] (short) (narrow) %v829_v44, 16 }
 0x205   :  { %947 = vxpose.xlu1.c.b16.start.end [1/1] (short) (narrow) %v845_v49, 16  ;;  %931 = vxpose.xlu0.c.b16.start.end [1/1] (short) (narrow) %v841_v50, 16 }
 0x206   :  { %v308_v58 = vpop.permute.xlu1 %307 }
 0x207   :  { %v313_v63 = vcombine.low %v4951_v3, %v308_v58  ;;  %v314_v1 = vcombine.high %v4951_v3, %v308_v58 }
 0x209   :  { %899 = vxpose.xlu0.c.b16.start.end [1/1] (short) (narrow) %v833_v54, 16  ;;  %476 = vrot.lane.b32.xlu1 %v4974_v52, %s4771_s0  ;;  %v321_v5 = vrot.slane %v313_v63, %v4933_v33  ;;  %v328_v7 = vrot.slane %v314_v1, %v4933_v33 }
 0x20a   :  { %v311_v59 = vpop.permute.xlu1 %310 }
 0x20b   :  { %v305_v60 = vpop.permute.xlu0 %304 }
 0x20c   :  { %v329_v61 = vcombine.low %v305_v60, %v311_v59  ;;  %v330_v62 = vcombine.high %v305_v60, %v311_v59 }
 0x20d   :  { %963 = vxpose.xlu0.c.b16.start.end [1/1] (short) (narrow) %v849_v57, 16  ;;  %482 = vrot.lane.b32.xlu1 %v4974_v52, %s4770_s27 }
 0x20e   :  { %v337_v2 = vrot.slane %v329_v61, %v4933_v33  ;;  %v344_v4 = vrot.slane %v330_v62, %v4933_v33 }
 0x210   :  { %v345_v8 = vcombine.low %v321_v5, %v337_v2  ;;  %v346_v9 = vcombine.high %v321_v5, %v337_v2  ;;  %v361_v10 = vcombine.low %v328_v7, %v344_v4  ;;  %v362_v11 = vcombine.high %v328_v7, %v344_v4 }
 0x211   :  { %2245 = vrot.lane.b32.xlu1 %v4928_v15, %s4771_s0 }
 0x212   :  { %v353_v14 = vrot.slane %v345_v8, %v4935_v39  ;;  %v360_v16 = vrot.slane %v346_v9, %v4935_v39  ;;  %v369_v3 = vrot.slane %v361_v10, %v4935_v39  ;;  %v376_v17 = vrot.slane %v362_v11, %v4935_v39 }
 0x214   :  { %v377_v20 = vcombine.high %v353_v14, %v4768_v0  ;;  %v378_v22 = vcombine.high %v360_v16, %v4768_v0  ;;  %v379_v23 = vcombine.high %v369_v3, %v4768_v0  ;;  %v380_v24 = vcombine.high %v376_v17, %v4768_v0 }
 0x215   :  { %2251 = vrot.lane.b32.xlu1 %v4928_v15, %s4770_s27  ;;  %v4346_v32 = vpack.c.bf16 %v369_v3, %v353_v14  ;;  %v4347_v34 = vpack.c.bf16 %v376_v17, %v360_v16 }
 0x216   :  { %479 = vrot.lane.b32.xlu0 %v4974_v52, %s4772_s5  ;;  %v4348_v29 = vpack.c.bf16 %v379_v23, %v377_v20  ;;  %v4349_v30 = vpack.c.bf16 %v380_v24, %v378_v22 }
 0x217   :  { %v568_v43 = vrot.slane %v4346_v32, %v4933_v33  ;;  %v576_v44 = vrot.slane %v4347_v34, %v4933_v33 }
 0x218   :  { %v593_v37 = vrot.slane %v4348_v29, %v4933_v33  ;;  %v601_v40 = vrot.slane %v4349_v30, %v4933_v33 }
 0x219   :  { %v577_v51 = vcombine.low %v568_v43, %v576_v44 }
 0x21a   :  { %2248 = vrot.lane.b32.xlu0 %v4928_v15, %s4772_s5  ;;  %v602_v47 = vcombine.low %v593_v37, %v601_v40 }
 0x21b   :  { %v584_v57 = vrot.slane %v577_v51, %v4935_v39 }
 0x21c   :  { %v609_v54 = vrot.slane %v602_v47, %v4935_v39 }
 0x21d   :  { %v614_v10 = vshrl.u32 %v584_v57, 16  ;;  %v585_v3 = vcombine.high %v584_v57, %v4775_v38 }
 0x21e   :  { %v615_v62 = vshrl.u32 %v609_v54, 16  ;;  %v613_v9 = vpack.i.b16 %v609_v54, %v584_v57  ;;  %v610_v14 = vcombine.high %v609_v54, %v4775_v38 }
 0x21f   :  { %v620_v20 = vshrl.u32 %v585_v3, 16 }
 0x25f   :  { %v923_v12 = vpop.trf.xlu1  ;;  %v859_v13 = vpop.trf.xlu0 }
 0x260   :  { %v979_v25 = vcombine.low %v859_v13, %v923_v12  ;;  %v616_v13 = vpack.i.b16 %v615_v62, %v614_v10 }
 0x262   :  { %v986_v35 = vrot.slane %v979_v25, %v4933_v33 }
 0x263   :  { %v875_v18 = vpop.trf.xlu1  ;;  %v891_v19 = vpop.trf.xlu0 }
 0x267   :  { %v955_v26 = vpop.trf.xlu1  ;;  %v939_v27 = vpop.trf.xlu0 }
 0x268   :  { %v987_v28 = vcombine.low %v891_v19, %v955_v26  ;;  %v1004_v42 = vcombine.low %v875_v18, %v939_v27  ;;  %v621_v18 = vshrl.u32 %v610_v14, 16  ;;  %v619_v19 = vpack.i.b16 %v610_v14, %v585_v3 }
 0x26a   :  { %v994_v31 = vrot.slane %v987_v28, %v4933_v33  ;;  %v1011_v49 = vrot.slane %v1004_v42, %v4933_v33  ;;  %v622_v23 = vpack.i.b16 %v621_v18, %v620_v20 }
 0x26b   :  { %v907_v36 = vpop.trf.xlu0 }
 0x26c   :  { %v995_v41 = vcombine.low %v986_v35, %v994_v31 }
 0x26e   :  { %v1002_v48 = vrot.slane %v995_v41, %v4935_v39 }
 0x26f   :  { %v971_v45 = vpop.trf.xlu0 }
 0x270   :  { %v1012_v46 = vcombine.low %v907_v36, %v971_v45  ;;  %v1003_v55 = vcombine.high %v1002_v48, %v4775_v38  ;;  %v1032_v59 = vshrl.u32 %v1002_v48, 16 }
 0x272   :  { %v1019_v50 = vrot.slane %v1012_v46, %v4933_v33  ;;  %v1038_v63 = vshrl.u32 %v1003_v55, 16 }
 0x274   :  { %v1020_v53 = vcombine.low %v1011_v49, %v1019_v50 }
 0x276   :  { %v1027_v56 = vrot.slane %v1020_v53, %v4935_v39 }
 0x278   :  { %v1031_v58 = vpack.i.b16 %v1027_v56, %v1002_v48  ;;  %v1033_v60 = vshrl.u32 %v1027_v56, 16  ;;  %v1028_v61 = vcombine.high %v1027_v56, %v4775_v38 }
 0x27a   :  { %v1047_v1 = vsel %vm1045_vm2, %v1031_v58, 0  ;;  %v1034_v2 = vpack.i.b16 %v1033_v60, %v1032_v59  ;;  %v1037_v4 = vpack.i.b16 %v1028_v61, %v1003_v55  ;;  %v1039_v5 = vshrl.u32 %v1028_v61, 16 }
 0x27b   :  { %4469 = vmatpush3.bf16.msra.mxu1 %v1047_v1  ;;  %v477_v7 = vpop.permute.xlu1 %476 }
 0x27c   :  { %v1093_v8 = vsel %vm1045_vm2, %v1034_v2, 0  ;;  %4480 = vmatprep.subr.bf16.mxu1 %v4768_v0  ;;  %v1040_v11 = vpack.i.b16 %v1039_v5, %v1038_v63  ;;  %v1139_v12 = vsel %vm1045_vm2, %v1037_v4, 0 }
 0x27d   :  { %4475 = vmatpush3.bf16.msra.mxu0 %v1093_v8 }
 0x27e   :  { %4471 = vmatmul.mubr.msk.bf16.vlgmr.msra.gmra.mxu1 %vm1041_vm3, %v613_v9  ;;  %4486 = vmatprep.subr.bf16.mxu0 %v4768_v0  ;;  %v1185_v16 = vsel %vm1045_vm2, %v1040_v11, 0 }
 0x27f   :  { %4481 = vmatpush3.bf16.msra.mxu1 %v1139_v12  ;;  %4482 = vmatprep.mubr.msk.bf16.mxu1 %vm4769_vm0, %v4768_v0  ;;  %v483_v17 = vpop.permute.xlu1 %482 }
 0x280   :  { %4477 = vmatmul.mubr.msk.bf16.vlgmr.msra.gmra.mxu0 %vm1041_vm3, %v616_v13  ;;  %4492 = vmatprep.subr.bf16.mxu1 %v4768_v0  ;;  %v501_v22 = vcombine.low %v477_v7, %v483_v17  ;;  %v502_v24 = vcombine.high %v477_v7, %v483_v17 }
 0x281   :  { %4487 = vmatpush3.bf16.msra.mxu0 %v1185_v16  ;;  %4488 = vmatprep.mubr.msk.bf16.mxu0 %vm4769_vm0, %v4768_v0 }
 0x282   :  { %4498 = vmatprep.subr.bf16.mxu0 %v4768_v0  ;;  %v509_v27 = vrot.slane %v501_v22, %v4933_v33  ;;  %v516_v30 = vrot.slane %v502_v24, %v4933_v33 }
 0x283   :  { %v2246_v25 = vpop.permute.xlu1 %2245 }
 0x286   :  { %4483 = vmatmul.mubr.msk.bf16.vlgmr.msra.gmra.mxu1 %vm1041_vm3, %v619_v19 }
 0x287   :  { %4494 = vmatprep.mubr.msk.bf16.mxu1 %vm4769_vm0, %v4768_v0  ;;  %v2252_v37 = vpop.permute.xlu1 %2251 }
 0x288   :  { %4489 = vmatmul.mubr.msk.bf16.vlgmr.msra.gmra.mxu0 %vm1041_vm3, %v622_v23  ;;  %v480_v26 = vpop.permute.xlu0 %479  ;;  %v2270_v43 = vcombine.low %v2246_v25, %v2252_v37  ;;  %v2271_v58 = vcombine.high %v2246_v25, %v2252_v37 }
 0x289   :  { %v485_v28 = vcombine.low %v4974_v52, %v480_v26  ;;  %v486_v29 = vcombine.high %v4974_v52, %v480_v26  ;;  %4500 = vmatprep.mubr.msk.bf16.mxu0 %vm4769_vm0, %v4768_v0 }
 0x28a   :  { %v2278_v50 = vrot.slane %v2270_v43, %v4933_v33  ;;  %v2285_v2 = vrot.slane %v2271_v58, %v4933_v33 }
 0x28b   :  { %v493_v31 = vrot.slane %v485_v28, %v4933_v33  ;;  %v500_v32 = vrot.slane %v486_v29, %v4933_v33 }
 0x28c   :  { %v2249_v34 = vpop.permute.xlu0 %2248 }
 0x28d   :  { %v517_v35 = vcombine.low %v493_v31, %v509_v27  ;;  %v518_v36 = vcombine.high %v493_v31, %v509_v27  ;;  %v2254_v40 = vcombine.low %v4928_v15, %v2249_v34  ;;  %v533_v42 = vcombine.low %v500_v32, %v516_v30 }
 0x28e   :  { %v534_v49 = vcombine.high %v500_v32, %v516_v30  ;;  %v2255_v54 = vcombine.high %v4928_v15, %v2249_v34 }
 0x28f   :  { %v525_v41 = vrot.slane %v517_v35, %v4935_v39  ;;  %v532_v45 = vrot.slane %v518_v36, %v4935_v39  ;;  %v2262_v46 = vrot.slane %v2254_v40, %v4933_v33  ;;  %v541_v48 = vrot.slane %v533_v42, %v4935_v39 }
 0x290   :  { %v548_v56 = vrot.slane %v534_v49, %v4935_v39  ;;  %v2269_v61 = vrot.slane %v2255_v54, %v4933_v33 }
 0x291   :  { %v553_v52 = vpack.c.bf16 %v525_v41, %v525_v41  ;;  %v549_v44 = vcombine.high %v525_v41, %v4768_v0  ;;  %v555_v51 = vpack.c.bf16 %v532_v45, %v532_v45  ;;  %v550_v53 = vcombine.high %v532_v45, %v4768_v0 }
 0x292   :  { %v557_v55 = vpack.c.bf16 %v541_v48, %v541_v48  ;;  %v2286_v57 = vcombine.low %v2262_v46, %v2278_v50  ;;  %v551_v60 = vcombine.high %v541_v48, %v4768_v0  ;;  %v559_v62 = vpack.c.bf16 %v548_v56, %v548_v56 }
 0x293   :  { %1275 = vxpose.xlu0.c.b16.start.end [1/1] (short) (narrow) %v553_v52, 16  ;;  %v554_v47 = vpack.c.bf16 %v549_v44, %v549_v44  ;;  %v556_v59 = vpack.c.bf16 %v550_v53, %v550_v53  ;;  %v2287_v1 = vcombine.high %v2262_v46, %v2278_v50  ;;  %v552_v4 = vcombine.high %v548_v56, %v4768_v0 }
 0x294   :  { %v2294_v63 = vrot.slane %v2286_v57, %v4935_v39  ;;  %v558_v15 = vpack.c.bf16 %v551_v60, %v551_v60  ;;  %v2302_v8 = vcombine.low %v2269_v61, %v2285_v2  ;;  %v2303_v13 = vcombine.high %v2269_v61, %v2285_v2 }
 0x295   :  { %1291 = vxpose.xlu1.c.b16.start.end [1/1] (short) (narrow) %v554_v47, 16  ;;  %v2301_v7 = vrot.slane %v2287_v1, %v4935_v39  ;;  %v560_v9 = vpack.c.bf16 %v552_v4, %v552_v4 }
 0x296   :  { %v2322_v5 = vpack.c.bf16 %v2294_v63, %v2294_v63  ;;  %v2318_v10 = vcombine.high %v2294_v63, %v4768_v0  ;;  %v2310_v12 = vrot.slane %v2302_v8, %v4935_v39  ;;  %v2317_v17 = vrot.slane %v2303_v13, %v4935_v39 }
 0x297   :  { %1307 = vxpose.xlu0.c.b16.start.end [1/1] (short) (narrow) %v555_v51, 16  ;;  %v2324_v11 = vpack.c.bf16 %v2301_v7, %v2301_v7  ;;  %v2319_v16 = vcombine.high %v2301_v7, %v4768_v0 }
 0x298   :  { %v2323_v14 = vpack.c.bf16 %v2318_v10, %v2318_v10  ;;  %v2326_v3 = vpack.c.bf16 %v2310_v12, %v2310_v12  ;;  %v2320_v19 = vcombine.high %v2310_v12, %v4768_v0  ;;  %v2328_v20 = vpack.c.bf16 %v2317_v17, %v2317_v17 }
 0x299   :  { %1339 = vxpose.xlu1.c.b16.start.end [1/1] (short) (narrow) %v557_v55, 16  ;;  %v2325_v18 = vpack.c.bf16 %v2319_v16, %v2319_v16  ;;  %v2321_v23 = vcombine.high %v2317_v17, %v4768_v0 }
 0x29a   :  { %v2327_v22 = vpack.c.bf16 %v2320_v19, %v2320_v19 }
 0x29b   :  { %1323 = vxpose.xlu0.c.b16.start.end [1/1] (short) (narrow) %v556_v59, 16  ;;  %v2329_v24 = vpack.c.bf16 %v2321_v23, %v2321_v23 }
 0x29d   :  { %1371 = vxpose.xlu1.c.b16.start.end [1/1] (short) (narrow) %v559_v62, 16 }
 0x29f   :  { %1355 = vxpose.xlu0.c.b16.start.end [1/1] (short) (narrow) %v558_v15, 16 }
 0x2a1   :  { %2478 = vxpose.xlu1.c.b16.start.end [1/1] (short) (narrow) %v2322_v5, 16 }
 0x2a3   :  { %1387 = vxpose.xlu0.c.b16.start.end [1/1] (short) (narrow) %v560_v9, 16 }
 0x2a5   :  { %2510 = vxpose.xlu1.c.b16.start.end [1/1] (short) (narrow) %v2324_v11, 16 }
 0x2a7   :  { %2494 = vxpose.xlu0.c.b16.start.end [1/1] (short) (narrow) %v2323_v14, 16 }
 0x2a9   :  { %2542 = vxpose.xlu1.c.b16.start.end [1/1] (short) (narrow) %v2326_v3, 16 }
 0x2ab   :  { %2526 = vxpose.xlu0.c.b16.start.end [1/1] (short) (narrow) %v2325_v18, 16 }
 0x2ad   :  { %2574 = vxpose.xlu1.c.b16.start.end [1/1] (short) (narrow) %v2328_v20, 16 }
 0x2af   :  { %2558 = vxpose.xlu0.c.b16.start.end [1/1] (short) (narrow) %v2327_v22, 16 }
 0x2b3   :  { %2590 = vxpose.xlu0.c.b16.start.end [1/1] (short) (narrow) %v2329_v24, 16 }
 0x2f5   :  { %v1283_v25 = vpop.trf.xlu0 }
 0x2f7   :  { %v1299_v26 = vpop.trf.xlu1 }
 0x2f9   :  { %v1315_v27 = vpop.trf.xlu0 }
 0x2fb   :  { %v1347_v28 = vpop.trf.xlu1 }
 0x2fc   :  { %v1403_v30 = vcombine.low %v1283_v25, %v1347_v28 }
 0x2fd   :  { %v1331_v29 = vpop.trf.xlu0 }
 0x2fe   :  { %v1410_v35 = vrot.slane %v1403_v30, %v4933_v33 }
 0x2ff   :  { %v1379_v31 = vpop.trf.xlu1 }
 0x300   :  { %v1411_v32 = vcombine.low %v1315_v27, %v1379_v31 }
 0x301   :  { %v1363_v34 = vpop.trf.xlu0 }
 0x302   :  { %v1437_v36 = vcombine.low %v1299_v26, %v1363_v34  ;;  %v1418_v37 = vrot.slane %v1411_v32, %v4933_v33 }
 0x303   :  { %v2486_v40 = vpop.trf.xlu1 }
 0x304   :  { %v1419_v41 = vcombine.low %v1410_v35, %v1418_v37  ;;  %v1420_v43 = vcombine.high %v1410_v35, %v1418_v37  ;;  %v1444_v52 = vrot.slane %v1437_v36, %v4933_v33 }
 0x305   :  { %v1395_v42 = vpop.trf.xlu0 }
 0x306   :  { %v1445_v44 = vcombine.low %v1331_v29, %v1395_v42  ;;  %v1427_v47 = vrot.slane %v1419_v41, %v4935_v39  ;;  %v1434_v48 = vrot.slane %v1420_v43, %v4935_v39 }
 0x307   :  { %v2518_v45 = vpop.trf.xlu1 }
 0x308   :  { %v1452_v46 = vrot.slane %v1445_v44, %v4933_v33  ;;  %v1436_v53 = vcombine.high %v1434_v48, %v4775_v38  ;;  %v1475_v57 = vshrl.u32 %v1427_v47, 16  ;;  %v1435_v59 = vcombine.high %v1427_v47, %v4775_v38 }
 0x309   :  { %v2502_v49 = vpop.trf.xlu0  ;;  %v1491_v60 = vshrl.u32 %v1434_v48, 16 }
 0x30a   :  { %v1453_v50 = vcombine.low %v1444_v52, %v1452_v46  ;;  %v1454_v51 = vcombine.high %v1444_v52, %v1452_v46  ;;  %v1499_v5 = vshrl.u32 %v1436_v53, 16  ;;  %v1483_v7 = vshrl.u32 %v1435_v59, 16 }
 0x30b   :  { %v2550_v54 = vpop.trf.xlu1 }
 0x30c   :  { %v1461_v55 = vrot.slane %v1453_v50, %v4935_v39  ;;  %v1468_v56 = vrot.slane %v1454_v51, %v4935_v39  ;;  %v2606_v58 = vcombine.low %v2486_v40, %v2550_v54 }
 0x30d   :  { %v2534_v61 = vpop.trf.xlu0 }
 0x30e   :  { %v1489_v62 = vpack.i.b16 %v1468_v56, %v1434_v48  ;;  %v1476_v63 = vshrl.u32 %v1461_v55, 16  ;;  %v1473_v1 = vpack.i.b16 %v1461_v55, %v1427_v47  ;;  %v1469_v2 = vcombine.high %v1461_v55, %v4775_v38 }
 0x30f   :  { %v1492_v15 = vshrl.u32 %v1468_v56, 16  ;;  %v1470_v4 = vcombine.high %v1468_v56, %v4775_v38  ;;  %v2582_v8 = vpop.trf.xlu1  ;;  %v2613_v11 = vrot.slane %v2606_v58, %v4933_v33 }
 0x310   :  { %1567 = vxpose.xlu0.c.b16.start.end [1/1] (short) (narrow) %v1489_v62, 16  ;;  %v1477_v9 = vpack.i.b16 %v1476_v63, %v1475_v57  ;;  %1503 = vxpose.xlu1.c.b16.start.end [1/1] (short) (narrow) %v1473_v1, 16  ;;  %v1484_v10 = vshrl.u32 %v1469_v2, 16  ;;  %v2614_v12 = vcombine.low %v2518_v45, %v2582_v8  ;;  %v1481_v19 = vpack.i.b16 %v1469_v2, %v1435_v59 }
 0x311   :  { %v1493_v13 = vpack.i.b16 %v1492_v15, %v1491_v60  ;;  %v1500_v14 = vshrl.u32 %v1470_v4, 16  ;;  %v2566_v16 = vpop.trf.xlu0  ;;  %v1497_v26 = vpack.i.b16 %v1470_v4, %v1436_v53 }
 0x312   :  { %v2640_v3 = vcombine.low %v2502_v49, %v2566_v16  ;;  %v2621_v17 = vrot.slane %v2614_v12, %v4933_v33  ;;  %v1485_v20 = vpack.i.b16 %v1484_v10, %v1483_v7 }
 0x313   :  { %v5080_v18 = vpack.i.b16 %v1500_v14, %v1499_v5 }
 0x314   :  { %1519 = vxpose.xlu0.c.b16.start.end [1/1] (short) (narrow) %v1477_v9, 16  ;;  %1583 = vxpose.xlu1.c.b16.start.end [1/1] (short) (narrow) %v1493_v13, 16  ;;  %v2623_v22 = vcombine.high %v2613_v11, %v2621_v17  ;;  %v2647_v24 = vrot.slane %v2640_v3, %v4933_v33  ;;  %v2622_v30 = vcombine.low %v2613_v11, %v2621_v17 }
 0x315   :  { %v2598_v23 = vpop.trf.xlu0 }
 0x316   :  { %v2648_v25 = vcombine.low %v2534_v61, %v2598_v23  ;;  %v2630_v32 = vrot.slane %v2622_v30, %v4935_v39  ;;  %v5087_v34 = vrot.slane %v2623_v22, %v4935_v39 }
 0x318   :  { %1535 = vxpose.xlu0.c.b16.start.end [1/1] (short) (narrow) %v1481_v19, 16  ;;  %1551 = vxpose.xlu1.c.b16.start.end [1/1] (short) (narrow) %v1485_v20, 16  ;;  %v2655_v27 = vrot.slane %v2648_v25, %v4933_v33  ;;  %v2678_v36 = vshrl.u32 %v2630_v32, 16  ;;  %v5093_v40 = vcombine.high %v2630_v32, %v4775_v38  ;;  %v5102_v43 = vcombine.high %v5087_v34, %v4775_v38 }
 0x319   :  { %v2694_v44 = vshrl.u32 %v5087_v34, 16 }
 0x31a   :  { %v2657_v28 = vcombine.high %v2647_v24, %v2655_v27  ;;  %v2656_v29 = vcombine.low %v2647_v24, %v2655_v27  ;;  %v2686_v47 = vshrl.u32 %v5093_v40, 16  ;;  %v2702_v51 = vshrl.u32 %v5102_v43, 16 }
 0x31c   :  { %1599 = vxpose.xlu0.c.b16.start.end [1/1] (short) (narrow) %v1497_v26, 16  ;;  %v2664_v31 = vrot.slane %v2656_v29, %v4935_v39  ;;  %v5090_v35 = vrot.slane %v2657_v28, %v4935_v39 }
 0x31e   :  { %v2679_v37 = vshrl.u32 %v2664_v31, 16  ;;  %v5096_v41 = vcombine.high %v2664_v31, %v4775_v38  ;;  %v2692_v42 = vpack.i.b16 %v5090_v35, %v5087_v34  ;;  %v5106_v52 = vcombine.high %v5090_v35, %v4775_v38 }
 0x31f   :  { %v2695_v50 = vshrl.u32 %v5090_v35, 16  ;;  %v2676_v17 = vpack.i.b16 %v2664_v31, %v2630_v32 }
 0x320   :  { %v5109_v45 = vpack.i.b16 %v2679_v37, %v2678_v36  ;;  %v2684_v46 = vpack.i.b16 %v5096_v41, %v5093_v40  ;;  %v2687_v48 = vshrl.u32 %v5096_v41, 16  ;;  %v2700_v49 = vpack.i.b16 %v5106_v52, %v5102_v43 }
 0x321   :  { %v2703_v53 = vshrl.u32 %v5106_v52, 16  ;;  %v5123_v57 = vpack.i.b16 %v2695_v50, %v2694_v44 }
 0x322   :  { %v5120_v55 = vpack.i.b16 %v2687_v48, %v2686_v47 }
 0x323   :  { %v5125_v58 = vpack.i.b16 %v2703_v53, %v2702_v51 }
 0x33e   :  { %v1083_v54 = vpop.f32.mrf.mxu1 }
 0x33f   :  { %v1227_v56 = vsel %vm1041_vm3, %v1083_v54, -inf }
 0x340   :  { %v4472_v59 = vpop.f32.mrf.mxu1  ;;  %1228 = vmax.xlane.f32.xlu1 %v1227_v56  ;;  %v1129_v60 = vpop.f32.mrf.mxu0 }
 0x341   :  { %v1230_v61 = vsel %vm1041_vm3, %v1129_v60, -inf }
 0x342   :  { %v1086_v62 = vpop.f32.mrf.mxu1  ;;  %1231 = vmax.xlane.f32.xlu0 %v1230_v61  ;;  %v4478_v63 = vpop.f32.mrf.mxu0 }
 0x344   :  { %v4473_v1 = vpop.f32.mrf.mxu1  ;;  %v1132_v2 = vpop.f32.mrf.mxu0 }
 0x346   :  { %v4479_v15 = vpop.f32.mrf.mxu0  ;;  %v5128_v4 = vpop.f32.mrf.mxu1 }
 0x347   :  { %v1233_v5 = vsel %vm1041_vm3, %v5128_v4, -inf }
 0x348   :  { %v4484_v7 = vpop.f32.mrf.mxu1  ;;  %1234 = vmax.xlane.f32.xlu1 %v1233_v5  ;;  %v1221_v8 = vpop.f32.mrf.mxu0 }
 0x349   :  { %v1236_v9 = vsel %vm1041_vm3, %v1221_v8, -inf }
 0x34a   :  { %v1178_v10 = vpop.f32.mrf.mxu1  ;;  %1237 = vmax.xlane.f32.xlu0 %v1236_v9  ;;  %v4490_v11 = vpop.f32.mrf.mxu0 }
 0x34c   :  { %v4485_v12 = vpop.f32.mrf.mxu1  ;;  %v1224_v13 = vpop.f32.mrf.mxu0 }
 0x34e   :  { %v4491_v14 = vpop.f32.mrf.mxu0 }
 0x372   :  { %v1575_v16 = vpop.trf.xlu0  ;;  %v1511_v3 = vpop.trf.xlu1 }
 0x373   :  { %v1631_v19 = vcombine.low %v1511_v3, %v1575_v16 }
 0x375   :  { %1615 = vxpose.xlu1.c.b16.start.end [1/1] (short) (narrow) %v5080_v18, 16  ;;  %v1638_v27 = vrot.slane %v1631_v19, %v4933_v33 }
 0x376   :  { %v1527_v20 = vpop.trf.xlu0  ;;  %v1591_v22 = vpop.trf.xlu1 }
 0x377   :  { %2706 = vxpose.xlu0.c.b16.start.end [1/1] (short) (narrow) %v2676_v17, 16  ;;  %v1656_v23 = vcombine.low %v1527_v20, %v1591_v22 }
 0x379   :  { %v1663_v53 = vrot.slane %v1656_v23, %v4933_v33 }
 0x37a   :  { %v1543_v24 = vpop.trf.xlu0  ;;  %v1559_v30 = vpop.trf.xlu1 }
 0x37e   :  { %v1607_v25 = vpop.trf.xlu0 }
 0x37f   :  { %v1639_v26 = vcombine.low %v1543_v24, %v1607_v25 }
 0x381   :  { %v1646_v28 = vrot.slane %v1639_v26, %v4933_v33 }
 0x383   :  { %v1647_v29 = vcombine.low %v1638_v27, %v1646_v28 }
 0x385   :  { %v5137_v51 = vrot.slane %v1647_v29, %v4935_v39 }
 0x387   :  { %v1684_v2 = vshrl.u32 %v5137_v51, 16 }
 0x3c9   :  { %v1229_v36 = vpop.xlane.xlu1 %1228 }
 0x3ca   :  { %v1239_v37 = vsub.f32 %v1083_v54, %v1229_v36 }
 0x3cb   :  { %v1232_v44 = vpop.xlane.xlu0 %1231 }
 0x3cc   :  { %v1243_v31 = vmul.f32 1.442695, %v1239_v37  ;;  %v1240_v32 = vsub.f32 %v1129_v60, %v1232_v44  ;;  %v5144_v60 = vcombine.high %v5137_v51, %v4775_v38 }
 0x3ce   :  { %4636 = vpow2.f32 %v1243_v31  ;;  %v1245_v18 = vmul.f32 1.442695, %v1240_v32  ;;  %v1690_v9 = vshrl.u32 %v5144_v60, 16 }
 0x3d0   :  { %4638 = vpow2.f32 %v1245_v18 }
 0x3d1   :  { %v1235_v47 = vpop.xlane.xlu1 %1234 }
 0x3d2   :  { %v1241_v20 = vsub.f32 %v5128_v4, %v1235_v47 }
 0x3d3   :  { %v1238_v14 = vpop.xlane.xlu0 %1237 }
 0x3d4   :  { %v1242_v16 = vsub.f32 %v1221_v8, %v1238_v14  ;;  %v1247_v22 = vmul.f32 1.442695, %v1241_v20 }
 0x3d6   :  { %v1249_v3 = vmul.f32 1.442695, %v1242_v16 }
 0x3d7   :  { %v1623_v48 = vpop.trf.xlu1 }
 0x3d8   :  { %v1664_v50 = vcombine.low %v1559_v30, %v1623_v48  ;;  %4640 = vpow2.f32 %v1249_v3 }
 0x3d9   :  { %4642 = vpow2.f32 %v1247_v22 }
 0x3da   :  { %v1671_v56 = vrot.slane %v1664_v50, %v4933_v33 }
 0x3db   :  { %v4637_v59 = vpop.eup %4636 }
 0x3dc   :  { %v1672_v61 = vcombine.low %v1663_v53, %v1671_v56  ;;  %v1251_v54 = vsel %vm1041_vm3, %v4637_v59, 0.0 }
 0x3dd   :  { %v4639_v62 = vpop.eup %4638  ;;  %1252 = vadd.xlane.f32.xlu1 %v1251_v54 }
 0x3de   :  { %v1679_v63 = vrot.slane %v1672_v61, %v4935_v39  ;;  %v1254_v1 = vsel %vm1041_vm3, %v4639_v62, 0.0 }
 0x3df   :  { %1255 = vadd.xlane.f32.xlu0 %v1254_v1 }
 0x3e0   :  { %v5150_v15 = vcombine.high %v1679_v63, %v4775_v38  ;;  %v1683_v5 = vpack.i.b16 %v1679_v63, %v5137_v51  ;;  %v1685_v7 = vshrl.u32 %v1679_v63, 16 }
 0x3e2   :  { %v1691_v10 = vshrl.u32 %v5150_v15, 16  ;;  %v1686_v11 = vpack.i.b16 %v1685_v7, %v1684_v2  ;;  %v1689_v12 = vpack.i.b16 %v5150_v15, %v5144_v60 }
 0x3e4   :  { %v5157_v13 = vpack.i.b16 %v1691_v10, %v1690_v9 }
 0x3e5   :  { %v4641_v17 = vpop.eup %4640 }
 0x3e6   :  { %v1260_v19 = vsel %vm1041_vm3, %v4641_v17, 0.0  ;;  %v5168_v23 = vpop.eup %4642 }
 0x3e7   :  { %v1257_v8 = vsel %vm1041_vm3, %v5168_v23, 0.0 }
 0x3f5   :  { %2162 = vrot.lane.b32.xlu0 %v4931_v21, %s4772_s5 }
 0x40a   :  { %2722 = vxpose.xlu1.c.b16.start.end [1/1] (short) (narrow) %v5109_v45, 16  ;;  %v5183_v45 = vpop.trf.xlu0 }
 0x40e   :  { %2159 = vrot.lane.b32.xlu1 %v4931_v21, %s4771_s0 }
 0x412   :  { %2165 = vrot.lane.b32.xlu1 %v4931_v21, %s4770_s27 }
 0x414   :  { %1261 = vadd.xlane.f32.xlu0 %v1260_v19 }
 0x436   :  { %1258 = vadd.xlane.f32.xlu1 %v1257_v8 }
 0x441   :  { %2738 = vxpose.xlu0.c.b16.start.end [1/1] (short) (narrow) %v2684_v46, 16 }
 0x445   :  { %2770 = vxpose.xlu0.c.b16.start.end [1/1] (short) (narrow) %v2692_v42, 16 }
 0x449   :  { %2802 = vxpose.xlu0.c.b16.start.end [1/1] (short) (narrow) %v2700_v49, 16 }
 0x452   :  { %2331 = vrot.lane.b32.xlu0 %v4959_v6, %s4771_s0 }
 0x463   :  { %2754 = vxpose.xlu1.c.b16.start.end [1/1] (short) (narrow) %v5120_v55, 16 }
 0x466   :  { %v1253_v4 = vpop.xlane.xlu1 %1252 }
 0x467   :  { %4644 = vrcp.f32 %v1253_v4  ;;  %2786 = vxpose.xlu1.c.b16.start.end [1/1] (short) (narrow) %v5123_v57, 16 }
 0x468   :  { %v1256_v40 = vpop.xlane.xlu0 %1255 }
 0x469   :  { %4646 = vrcp.f32 %v1256_v40 }
 0x46b   :  { %2818 = vxpose.xlu1.c.b16.start.end [1/1] (short) (narrow) %v5125_v58, 16 }
 0x46c   :  { %v2163_v55 = vpop.permute.xlu0 %2162  ;;  %v2730_v58 = vpop.trf.xlu1 }
 0x46d   :  { %v2168_v37 = vcombine.low %v4931_v21, %v2163_v55  ;;  %v2169_v44 = vcombine.high %v4931_v21, %v2163_v55 }
 0x46f   :  { %2334 = vrot.lane.b32.xlu1 %v4959_v6, %s4772_s5  ;;  %v2176_v47 = vrot.slane %v2168_v37, %v4933_v33  ;;  %v2183_v48 = vrot.slane %v2169_v44, %v4933_v33 }
 0x474   :  { %v4645_v34 = vpop.eup %4644 }
 0x475   :  { %v1267_v35 = vmul.f32 %v4645_v34, %v4637_v59 }
 0x476   :  { %v4647_v41 = vpop.eup %4646 }
 0x477   :  { %v1271_v42 = vpack.c.bf16 %v1267_v35, %v1267_v35  ;;  %v1268_v43 = vmul.f32 %v4647_v41, %v4639_v62 }
 0x479   :  { %v1697_v52 = vsel %vm1041_vm3, %v1271_v42, 0  ;;  %v1272_v46 = vpack.c.bf16 %v1268_v43, %v1268_v43 }
 0x47a   :  { %4493 = vmatpush3.bf16.xpose.msra.mxu1 %v1697_v52 }
 0x47b   :  { %v1743_v49 = vsel %vm1041_vm3, %v1272_v46, 0  ;;  %4504 = vmatprep.subr.bf16.mxu1 %v4768_v0 }
 0x47c   :  { %4499 = vmatpush3.bf16.xpose.msra.mxu0 %v1743_v49 }
 0x47d   :  { %4510 = vmatprep.subr.bf16.mxu0 %v4768_v0 }
 0x480   :  { %v2160_v24 = vpop.permute.xlu1 %2159 }
 0x481   :  { %4495 = vmatmul.mubr.msk.bf16.vlgmr.msra.gmra.mxu1 %vm1041_vm3, %v1683_v5 }
 0x482   :  { %4506 = vmatprep.mubr.msk.bf16.mxu1 %vm4769_vm0, %v4768_v0 }
 0x483   :  { %4501 = vmatmul.mubr.msk.bf16.vlgmr.msra.gmra.mxu0 %vm1041_vm3, %v1686_v11 }
 0x484   :  { %4512 = vmatprep.mubr.msk.bf16.mxu0 %vm4769_vm0, %v4768_v0  ;;  %v2166_v28 = vpop.permute.xlu1 %2165 }
 0x485   :  { %v2184_v30 = vcombine.low %v2160_v24, %v2166_v28  ;;  %v2185_v36 = vcombine.high %v2160_v24, %v2166_v28 }
 0x487   :  { %v2192_v32 = vrot.slane %v2184_v30, %v4933_v33  ;;  %v2199_v18 = vrot.slane %v2185_v36, %v4933_v33 }
 0x489   :  { %v2200_v50 = vcombine.low %v2176_v47, %v2192_v32  ;;  %v2201_v51 = vcombine.high %v2176_v47, %v2192_v32  ;;  %v2216_v53 = vcombine.low %v2183_v48, %v2199_v18  ;;  %v2217_v56 = vcombine.high %v2183_v48, %v2199_v18 }
 0x48b   :  { %v2208_v59 = vrot.slane %v2200_v50, %v4935_v39  ;;  %v2215_v61 = vrot.slane %v2201_v51, %v4935_v39  ;;  %v2224_v54 = vrot.slane %v2216_v53, %v4935_v39  ;;  %v2231_v62 = vrot.slane %v2217_v56, %v4935_v39 }
 0x48d   :  { %v2232_v2 = vcombine.high %v2208_v59, %v4768_v0  ;;  %v2233_v5 = vcombine.high %v2215_v61, %v4768_v0  ;;  %v2234_v7 = vcombine.high %v2224_v54, %v4768_v0  ;;  %v2235_v9 = vcombine.high %v2231_v62, %v4768_v0 }
 0x48e   :  { %v4360_v19 = vpack.c.bf16 %v2224_v54, %v2208_v59  ;;  %v4361_v20 = vpack.c.bf16 %v2231_v62, %v2215_v61 }
 0x48f   :  { %v4362_v14 = vpack.c.bf16 %v2234_v7, %v2232_v2  ;;  %v4363_v16 = vpack.c.bf16 %v2235_v9, %v2233_v5 }
 0x490   :  { %v2431_v41 = vrot.slane %v4361_v20, %v4933_v33 }
 0x491   :  { %v2448_v8 = vrot.slane %v4362_v14, %v4933_v33  ;;  %v2456_v4 = vrot.slane %v4363_v16, %v4933_v33 }
 0x493   :  { %v2457_v46 = vcombine.low %v2448_v8, %v2456_v4 }
 0x49d   :  { %v1262_v57 = vpop.xlane.xlu0 %1261 }
 0x49e   :  { %4648 = vrcp.f32 %v1262_v57 }
 0x4a3   :  { %v2746_v31 = vpop.trf.xlu0 }
 0x4a7   :  { %v2778_v21 = vpop.trf.xlu0 }
 0x4a8   :  { %v2834_v10 = vcombine.low %v5183_v45, %v2778_v21  ;;  %v2423_v45 = vrot.slane %v4360_v19, %v4933_v33 }
 0x4aa   :  { %v2841_v3 = vrot.slane %v2834_v10, %v4933_v33 }
 0x4ab   :  { %v4649_v25 = vpop.eup %4648  ;;  %v2810_v1 = vpop.trf.xlu0 }
 0x4ac   :  { %v1270_v26 = vmul.f32 %v4649_v25, %v4641_v17  ;;  %v2842_v11 = vcombine.low %v2746_v31, %v2810_v1  ;;  %v2432_v25 = vcombine.low %v2423_v45, %v2431_v41 }
 0x4ae   :  { %v1274_v27 = vpack.c.bf16 %v1270_v26, %v1270_v26  ;;  %v2849_v17 = vrot.slane %v2842_v11, %v4933_v33 }
 0x4b0   :  { %v1835_v29 = vsel %vm1041_vm3, %v1274_v27, 0  ;;  %v2850_v40 = vcombine.low %v2841_v3, %v2849_v17  ;;  %v2464_v27 = vrot.slane %v2457_v46, %v4935_v39 }
 0x4b1   :  { %4511 = vmatpush3.bf16.xpose.msra.mxu0 %v1835_v29  ;;  %v2439_v29 = vrot.slane %v2432_v25, %v4935_v39 }
 0x4b2   :  { %4522 = vmatprep.subr.bf16.mxu0 %v4768_v0  ;;  %v2857_v49 = vrot.slane %v2850_v40, %v4935_v39  ;;  %v2470_v32 = vshrl.u32 %v2464_v27, 16  ;;  %v2465_v21 = vcombine.high %v2464_v27, %v4775_v38 }
 0x4b3   :  { %v2469_v51 = vshrl.u32 %v2439_v29, 16  ;;  %v2468_v59 = vpack.i.b16 %v2464_v27, %v2439_v29 }
 0x4b4   :  { %v2887_v36 = vshrl.u32 %v2857_v49, 16  ;;  %v2476_v61 = vshrl.u32 %v2465_v21, 16 }
 0x4b5   :  { %v2471_v56 = vpack.i.b16 %v2470_v32, %v2469_v51 }
 0x4b8   :  { %4513 = vmatmul.mubr.msk.bf16.vlgmr.msra.gmra.mxu0 %vm1041_vm3, %v5157_v13 }
 0x4b9   :  { %4524 = vmatprep.mubr.msk.bf16.mxu0 %vm4769_vm0, %v4768_v0 }
 0x4bf   :  { %v1259_v63 = vpop.xlane.xlu1 %1258 }
 0x4c0   :  { %4650 = vrcp.f32 %v1259_v63 }
 0x4c5   :  { %v2762_v13 = vpop.trf.xlu1 }
 0x4c9   :  { %v2794_v22 = vpop.trf.xlu1 }
 0x4ca   :  { %v2859_v34 = vcombine.low %v2730_v58, %v2794_v22 }
 0x4cc   :  { %v2866_v55 = vrot.slane %v2859_v34, %v4933_v33 }
 0x4cd   :  { %v4651_v35 = vpop.eup %4650  ;;  %v2826_v42 = vpop.trf.xlu1 }
 0x4ce   :  { %v2867_v43 = vcombine.low %v2762_v13, %v2826_v42  ;;  %v1269_v52 = vmul.f32 %v4651_v35, %v5168_v23  ;;  %v2858_v23 = vcombine.high %v2857_v49, %v4775_v38 }
 0x4d0   :  { %v2874_v57 = vrot.slane %v2867_v43, %v4933_v33  ;;  %v1273_v24 = vpack.c.bf16 %v1269_v52, %v1269_v52  ;;  %v2893_v18 = vshrl.u32 %v2858_v23, 16 }
 0x4d2   :  { %v2875_v26 = vcombine.low %v2866_v55, %v2874_v57  ;;  %v1789_v58 = vsel %vm1041_vm3, %v1273_v24, 0 }
 0x4d3   :  { %4505 = vmatpush3.bf16.xpose.msra.mxu1 %v1789_v58 }
 0x4d4   :  { %v2882_v28 = vrot.slane %v2875_v26, %v4935_v39  ;;  %4516 = vmatprep.subr.bf16.mxu1 %v4768_v0 }
 0x4d6   :  { %v2886_v30 = vpack.i.b16 %v2882_v28, %v2857_v49  ;;  %v2888_v37 = vshrl.u32 %v2882_v28, 16  ;;  %v2883_v44 = vcombine.high %v2882_v28, %v4775_v38 }
 0x4d8   :  { %v2889_v31 = vpack.i.b16 %v2888_v37, %v2887_v36  ;;  %v2894_v47 = vshrl.u32 %v2883_v44, 16  ;;  %v2900_v48 = vsel %vm1045_vm2, %v2886_v30, 0  ;;  %v2892_v15 = vpack.i.b16 %v2883_v44, %v2858_v23 }
 0x4da   :  { %4507 = vmatmul.mubr.msk.bf16.vlgmr.msra.gmra.mxu1 %vm1041_vm3, %v1689_v12  ;;  %v2946_v50 = vsel %vm1045_vm2, %v2889_v31, 0  ;;  %v2895_v53 = vpack.i.b16 %v2894_v47, %v2893_v18  ;;  %v2440_v12 = vcombine.high %v2439_v29, %v4775_v38  ;;  %v2992_v54 = vsel %vm1045_vm2, %v2892_v15, 0  ;;  %v2332_v31 = vpop.permute.xlu0 %2331 }
 0x4db   :  { %4517 = vmatpush3.bf16.msra.mxu1 %v2900_v48  ;;  %4523 = vmatpush3.bf16.msra.mxu0 %v2946_v50 }
 0x4dc   :  { %4534 = vmatprep.subr.bf16.mxu0 %v4768_v0  ;;  %4518 = vmatprep.mubr.msk.bf16.mxu1 %vm4769_vm0, %v4768_v0  ;;  %v3038_v60 = vsel %vm1045_vm2, %v2895_v53, 0  ;;  %v2475_v62 = vshrl.u32 %v2440_v12, 16  ;;  %v2474_v1 = vpack.i.b16 %v2465_v21, %v2440_v12 }
 0x4dd   :  { %4528 = vmatprep.subr.bf16.mxu1 %v4768_v0 }
 0x4de   :  { %4525 = vmatmul.mubr.msk.bf16.vlgmr.msra.gmra.mxu0 %vm1041_vm3, %v2471_v56  ;;  %v2477_v63 = vpack.i.b16 %v2476_v61, %v2475_v62 }
 0x4df   :  { %4535 = vmatpush3.bf16.msra.mxu0 %v3038_v60  ;;  %4536 = vmatprep.mubr.msk.bf16.mxu0 %vm4769_vm0, %v4768_v0 }
 0x4e0   :  { %4546 = vmatprep.subr.bf16.mxu0 %v4768_v0 }
 0x4e1   :  { %v2335_v30 = vpop.permute.xlu1 %2334 }
 0x4e2   :  { %4519 = vmatmul.mubr.msk.bf16.vlgmr.msra.gmra.mxu1 %vm1041_vm3, %v2468_v59  ;;  %v2340_v44 = vcombine.low %v4959_v6, %v2335_v30  ;;  %v2341_v18 = vcombine.high %v4959_v6, %v2335_v30 }
 0x4e3   :  { %4529 = vmatpush3.bf16.msra.mxu1 %v2992_v54  ;;  %4530 = vmatprep.mubr.msk.bf16.mxu1 %vm4769_vm0, %v4768_v0 }
 0x4e4   :  { %4540 = vmatprep.subr.bf16.mxu1 %v4768_v0  ;;  %v2348_v50 = vrot.slane %v2340_v44, %v4933_v33  ;;  %v2355_v56 = vrot.slane %v2341_v18, %v4933_v33 }
 0x4e6   :  { %4537 = vmatmul.mubr.msk.bf16.vlgmr.msra.gmra.mxu0 %vm1041_vm3, %v2477_v63 }
 0x4e7   :  { %4548 = vmatprep.mubr.msk.bf16.mxu0 %vm4769_vm0, %v4768_v0 }
 0x4ea   :  { %4531 = vmatmul.mubr.msk.bf16.vlgmr.msra.gmra.mxu1 %vm1041_vm3, %v2474_v1 }
 0x4eb   :  { %4542 = vmatprep.mubr.msk.bf16.mxu1 %vm4769_vm0, %v4768_v0 }
 0x541   :  { %v5266_v2 = vpop.f32.mrf.mxu1 }
 0x543   :  { %v4496_v5 = vpop.f32.mrf.mxu1  ;;  %v5268_v7 = vpop.f32.mrf.mxu0 }
 0x545   :  { %v1736_v9 = vpop.f32.mrf.mxu1  ;;  %v4502_v10 = vpop.f32.mrf.mxu0 }
 0x547   :  { %v4497_v11 = vpop.f32.mrf.mxu1  ;;  %v1782_v13 = vpop.f32.mrf.mxu0 }
 0x549   :  { %v4503_v14 = vpop.f32.mrf.mxu0 }
 0x578   :  { %v5270_v16 = vpop.f32.mrf.mxu0 }
 0x57a   :  { %v4514_v3 = vpop.f32.mrf.mxu0 }
 0x57c   :  { %v1874_v17 = vpop.f32.mrf.mxu0 }
 0x57e   :  { %v4515_v19 = vpop.f32.mrf.mxu0 }
 0x59a   :  { %v5272_v20 = vpop.f32.mrf.mxu1 }
 0x59c   :  { %v4508_v22 = vpop.f32.mrf.mxu1 }
 0x59e   :  { %v1828_v8 = vpop.f32.mrf.mxu1  ;;  %v5274_v4 = vpop.f32.mrf.mxu0 }
 0x59f   :  { %v3083_v40 = vsel %vm1041_vm3, %v5274_v4, -inf }
 0x5a0   :  { %v4509_v34 = vpop.f32.mrf.mxu1  ;;  %3084 = vmax.xlane.f32.xlu1 %v3083_v40  ;;  %v4526_v35 = vpop.f32.mrf.mxu0 }
 0x5a2   :  { %v5278_v45 = vpop.f32.mrf.mxu1  ;;  %v2985_v41 = vpop.f32.mrf.mxu0 }
 0x5a3   :  { %v3080_v42 = vsel %vm1041_vm3, %v5278_v45, -inf }
 0x5a4   :  { %3081 = vmax.xlane.f32.xlu0 %v3080_v42  ;;  %v4520_v43 = vpop.f32.mrf.mxu1  ;;  %v4527_v52 = vpop.f32.mrf.mxu0 }
 0x5a6   :  { %v2939_v46 = vpop.f32.mrf.mxu1  ;;  %v5282_v49 = vpop.f32.mrf.mxu0 }
 0x5a7   :  { %v3089_v55 = vsel %vm1041_vm3, %v5282_v49, -inf }
 0x5a8   :  { %v4521_v57 = vpop.f32.mrf.mxu1  ;;  %3090 = vmax.xlane.f32.xlu1 %v3089_v55  ;;  %v4538_v24 = vpop.f32.mrf.mxu0 }
 0x5aa   :  { %v5286_v25 = vpop.f32.mrf.mxu1  ;;  %v3077_v26 = vpop.f32.mrf.mxu0 }
 0x5ab   :  { %v3086_v58 = vsel %vm1041_vm3, %v5286_v25, -inf }
 0x5ac   :  { %3087 = vmax.xlane.f32.xlu0 %v3086_v58  ;;  %v4532_v27 = vpop.f32.mrf.mxu1  ;;  %v4539_v28 = vpop.f32.mrf.mxu0 }
 0x5ae   :  { %v3031_v23 = vpop.f32.mrf.mxu1 }
 0x5b0   :  { %v4533_v29 = vpop.f32.mrf.mxu1 }
 0x5b9   :  { %2337 = vrot.lane.b32.xlu1 %v4959_v6, %s4770_s27 }
 0x629   :  { %v5292_v36 = vpop.xlane.xlu1 %3084 }
 0x62d   :  { %v3082_v22 = vpop.xlane.xlu0 %3081 }
 0x631   :  { %v5294_v37 = vpop.xlane.xlu1 %3090 }
 0x635   :  { %v2338_v32 = vpop.permute.xlu1 %2337  ;;  %v3088_v8 = vpop.xlane.xlu0 %3087 }
 0x636   :  { %v2356_v47 = vcombine.low %v2332_v31, %v2338_v32  ;;  %v2357_v48 = vcombine.high %v2332_v31, %v2338_v32  ;;  %v3092_v31 = vsub.f32 %v5278_v45, %v3082_v22 }
 0x638   :  { %v2364_v51 = vrot.slane %v2356_v47, %v4933_v33  ;;  %v2371_v53 = vrot.slane %v2357_v48, %v4933_v33  ;;  %v3093_v47 = vsub.f32 %v5274_v4, %v5292_v36  ;;  %v3095_v4 = vsub.f32 %v5282_v49, %v5294_v37 }
 0x63a   :  { %v2372_v21 = vcombine.low %v2348_v50, %v2364_v51  ;;  %v2373_v60 = vcombine.high %v2348_v50, %v2364_v51  ;;  %v2388_v12 = vcombine.low %v2355_v56, %v2371_v53  ;;  %v2389_v63 = vcombine.high %v2355_v56, %v2371_v53 }
 0x63c   :  { %v2380_v15 = vrot.slane %v2372_v21, %v4935_v39  ;;  %v2387_v6 = vrot.slane %v2373_v60, %v4935_v39  ;;  %v2396_v62 = vrot.slane %v2388_v12, %v4935_v39  ;;  %v2403_v10 = vrot.slane %v2389_v63, %v4935_v39 }
 0x63d   :  { %v3096_v60 = vmul.f32 1.442695, %v3092_v31 }
 0x63e   :  { %v2408_v59 = vpack.c.bf16 %v2380_v15, %v2380_v15  ;;  %v2404_v61 = vcombine.high %v2380_v15, %v4768_v0  ;;  %v2410_v1 = vpack.c.bf16 %v2387_v6, %v2387_v6  ;;  %v2405_v5 = vcombine.high %v2387_v6, %v4768_v0 }
 0x63f   :  { %v2412_v9 = vpack.c.bf16 %v2396_v62, %v2396_v62  ;;  %v2406_v13 = vcombine.high %v2396_v62, %v4768_v0  ;;  %v2414_v14 = vpack.c.bf16 %v2403_v10, %v2403_v10  ;;  %v2407_v17 = vcombine.high %v2403_v10, %v4768_v0 }
 0x640   :  { %3128 = vxpose.xlu0.c.b16.start.end [1/1] (short) (narrow) %v2408_v59, 16  ;;  %v2409_v54 = vpack.c.bf16 %v2404_v61, %v2404_v61  ;;  %v2411_v11 = vpack.c.bf16 %v2405_v5, %v2405_v5  ;;  %v3094_v15 = vsub.f32 %v5286_v25, %v3088_v8  ;;  %v3098_v61 = vmul.f32 1.442695, %v3093_v47 }
 0x641   :  { %v2413_v3 = vpack.c.bf16 %v2406_v13, %v2406_v13  ;;  %v2415_v19 = vpack.c.bf16 %v2407_v17, %v2407_v17  ;;  %4652 = vpow2.f32 %v3096_v60  ;;  %v3102_v25 = vmul.f32 1.442695, %v3095_v4 }
 0x642   :  { %3144 = vxpose.xlu1.c.b16.start.end [1/1] (short) (narrow) %v2409_v54, 16  ;;  %v3100_v62 = vmul.f32 1.442695, %v3094_v15  ;;  %4654 = vpow2.f32 %v3098_v61 }
 0x644   :  { %3160 = vxpose.xlu0.c.b16.start.end [1/1] (short) (narrow) %v2410_v1, 16  ;;  %4656 = vpow2.f32 %v3100_v62 }
 0x645   :  { %4658 = vpow2.f32 %v3102_v25 }
 0x646   :  { %3192 = vxpose.xlu1.c.b16.start.end [1/1] (short) (narrow) %v2412_v9, 16 }
 0x648   :  { %3176 = vxpose.xlu0.c.b16.start.end [1/1] (short) (narrow) %v2411_v11, 16 }
 0x64a   :  { %3224 = vxpose.xlu1.c.b16.start.end [1/1] (short) (narrow) %v2414_v14, 16 }
 0x64c   :  { %3208 = vxpose.xlu0.c.b16.start.end [1/1] (short) (narrow) %v2413_v3, 16 }
 0x64e   :  { %v4653_v49 = vpop.eup %4652 }
 0x64f   :  { %v4655_v37 = vpop.eup %4654  ;;  %v3104_v11 = vsel %vm1041_vm3, %v4653_v49, 0.0 }
 0x650   :  { %3240 = vxpose.xlu0.c.b16.start.end [1/1] (short) (narrow) %v2415_v19, 16  ;;  %v3107_v14 = vsel %vm1041_vm3, %v4655_v37, 0.0 }
 0x651   :  { %v4657_v13 = vpop.eup %4656 }
 0x652   :  { %v4659_v3 = vpop.eup %4658  ;;  %v3110_v17 = vsel %vm1041_vm3, %v4657_v13, 0.0 }
 0x653   :  { %v3113_v19 = vsel %vm1041_vm3, %v4659_v3, 0.0 }
 0x6a2   :  { %v3136_v40 = vpop.trf.xlu0 }
 0x6a4   :  { %v3152_v34 = vpop.trf.xlu1 }
 0x6a6   :  { %v3168_v35 = vpop.trf.xlu0 }
 0x6a8   :  { %v3200_v41 = vpop.trf.xlu1 }
 0x6a9   :  { %v3256_v43 = vcombine.low %v3136_v40, %v3200_v41 }
 0x6aa   :  { %v3184_v42 = vpop.trf.xlu0 }
 0x6ab   :  { %v3263_v24 = vrot.slane %v3256_v43, %v4933_v33 }
 0x6ac   :  { %v3232_v52 = vpop.trf.xlu1 }
 0x6ad   :  { %v3264_v46 = vcombine.low %v3168_v35, %v3232_v52 }
 0x6ae   :  { %v3216_v55 = vpop.trf.xlu0 }
 0x6af   :  { %v3271_v57 = vrot.slane %v3264_v46, %v4933_v33  ;;  %v3290_v26 = vcombine.low %v3152_v34, %v3216_v55 }
 0x6b1   :  { %v3272_v58 = vcombine.low %v3263_v24, %v3271_v57  ;;  %v3297_v23 = vrot.slane %v3290_v26, %v4933_v33  ;;  %v3273_v48 = vcombine.high %v3263_v24, %v3271_v57 }
 0x6b2   :  { %v3248_v27 = vpop.trf.xlu0 }
 0x6b3   :  { %v3298_v28 = vcombine.low %v3184_v42, %v3248_v27  ;;  %v3280_v30 = vrot.slane %v3272_v58, %v4935_v39  ;;  %v3287_v54 = vrot.slane %v3273_v48, %v4935_v39 }
 0x6b5   :  { %v3305_v29 = vrot.slane %v3298_v28, %v4933_v33  ;;  %v3328_v50 = vshrl.u32 %v3280_v30, 16  ;;  %v3288_v56 = vcombine.high %v3280_v30, %v4775_v38  ;;  %v3344_v9 = vshrl.u32 %v3287_v54, 16 }
 0x6b6   :  { %v3289_v8 = vcombine.high %v3287_v54, %v4775_v38 }
 0x6b7   :  { %v3306_v44 = vcombine.low %v3297_v23, %v3305_v29  ;;  %v3307_v32 = vcombine.high %v3297_v23, %v3305_v29  ;;  %v3336_v6 = vshrl.u32 %v3288_v56, 16 }
 0x6b8   :  { %v3352_v35 = vshrl.u32 %v3289_v8, 16 }
 0x6b9   :  { %v3314_v18 = vrot.slane %v3306_v44, %v4935_v39  ;;  %v3321_v59 = vrot.slane %v3307_v32, %v4935_v39 }
 0x6bb   :  { %v3326_v51 = vpack.i.b16 %v3314_v18, %v3280_v30  ;;  %v3329_v53 = vshrl.u32 %v3314_v18, 16  ;;  %v3322_v21 = vcombine.high %v3314_v18, %v4775_v38  ;;  %v3345_v1 = vshrl.u32 %v3321_v59, 16 }
 0x6bc   :  { %v3342_v5 = vpack.i.b16 %v3321_v59, %v3287_v54  ;;  %v3323_v22 = vcombine.high %v3321_v59, %v4775_v38 }
 0x6bd   :  { %3356 = vxpose.xlu1.c.b16.start.end [1/1] (short) (narrow) %v3326_v51, 16  ;;  %v3330_v12 = vpack.i.b16 %v3329_v53, %v3328_v50  ;;  %v3337_v45 = vshrl.u32 %v3322_v21, 16  ;;  %v3334_v36 = vpack.i.b16 %v3322_v21, %v3288_v56  ;;  %v3346_v10 = vpack.i.b16 %v3345_v1, %v3344_v9 }
 0x6be   :  { %v3353_v40 = vshrl.u32 %v3323_v22, 16  ;;  %v3350_v34 = vpack.i.b16 %v3323_v22, %v3289_v8 }
 0x6bf   :  { %3372 = vxpose.xlu0.c.b16.start.end [1/1] (short) (narrow) %v3330_v12, 16  ;;  %v3338_v63 = vpack.i.b16 %v3337_v45, %v3336_v6 }
 0x6c0   :  { %v3354_v41 = vpack.i.b16 %v3353_v40, %v3352_v35 }
 0x6c1   :  { %3388 = vxpose.xlu1.c.b16.start.end [1/1] (short) (narrow) %v3334_v36, 16 }
 0x6c3   :  { %3404 = vxpose.xlu0.c.b16.start.end [1/1] (short) (narrow) %v3338_v63, 16 }
 0x6c5   :  { %3420 = vxpose.xlu1.c.b16.start.end [1/1] (short) (narrow) %v3342_v5, 16 }
 0x6c7   :  { %3436 = vxpose.xlu0.c.b16.start.end [1/1] (short) (narrow) %v3346_v10, 16 }
 0x6d2   :  { %3105 = vadd.xlane.f32.xlu1 %v3104_v11 }
 0x6d4   :  { %3108 = vadd.xlane.f32.xlu0 %v3107_v14 }
 0x6d6   :  { %3111 = vadd.xlane.f32.xlu1 %v3110_v17 }
 0x6d8   :  { %3114 = vadd.xlane.f32.xlu0 %v3113_v19 }
 0x703   :  { %3452 = vxpose.xlu1.c.b16.start.end [1/1] (short) (narrow) %v3350_v34, 16 }
 0x705   :  { %3468 = vxpose.xlu0.c.b16.start.end [1/1] (short) (narrow) %v3354_v41, 16 }
 0x709   :  { %1909 = vxpose.xlu0.b32.start.end [1/1] (short) (narrow) %v5268_v7, 8 }
 0x70d   :  { %1941 = vxpose.xlu0.b32.start.end [1/1] (short) (narrow) %v5272_v20, 8  ;;  %1877 = vxpose.xlu1.b32.start.end [1/1] (short) (narrow) %v5266_v2, 8 }
 0x711   :  { %1973 = vxpose.xlu1.b32.start.end [1/1] (short) (narrow) %v5270_v16, 8 }
 0x71f   :  { %v3364_v42 = vpop.trf.xlu1 }
 0x721   :  { %v3380_v43 = vpop.trf.xlu0 }
 0x723   :  { %v3396_v52 = vpop.trf.xlu1 }
 0x725   :  { %v3412_v46 = vpop.trf.xlu0 }
 0x727   :  { %v3428_v55 = vpop.trf.xlu1 }
 0x728   :  { %v3484_v2 = vcombine.low %v3364_v42, %v3428_v55 }
 0x729   :  { %v3444_v57 = vpop.trf.xlu0 }
 0x72a   :  { %v3509_v20 = vcombine.low %v3380_v43, %v3444_v57  ;;  %v3491_v47 = vrot.slane %v3484_v2, %v4933_v33 }
 0x72c   :  { %v3516_v44 = vrot.slane %v3509_v20, %v4933_v33 }
 0x75b   :  { %v3106_v24 = vpop.xlane.xlu1 %3105 }
 0x75c   :  { %4660 = vrcp.f32 %v3106_v24 }
 0x75d   :  { %v3109_v26 = vpop.xlane.xlu0 %3108 }
 0x75e   :  { %4662 = vrcp.f32 %v3109_v26 }
 0x75f   :  { %v3112_v58 = vpop.xlane.xlu1 %3111 }
 0x760   :  { %4664 = vrcp.f32 %v3112_v58 }
 0x761   :  { %v3115_v27 = vpop.xlane.xlu0 %3114 }
 0x762   :  { %4666 = vrcp.f32 %v3115_v27 }
 0x765   :  { %v3460_v7 = vpop.trf.xlu1 }
 0x766   :  { %v3492_v28 = vcombine.low %v3396_v52, %v3460_v7 }
 0x767   :  { %v3476_v23 = vpop.trf.xlu0 }
 0x768   :  { %v3517_v16 = vcombine.low %v3412_v46, %v3476_v23  ;;  %v3499_v30 = vrot.slane %v3492_v28, %v4933_v33 }
 0x769   :  { %v4661_v29 = vpop.eup %4660 }
 0x76a   :  { %v3524_v31 = vrot.slane %v3517_v16, %v4933_v33  ;;  %v3120_v32 = vmul.f32 %v4661_v29, %v4653_v49  ;;  %v3500_v56 = vcombine.low %v3491_v47, %v3499_v30 }
 0x76b   :  { %v4663_v18 = vpop.eup %4662 }
 0x76c   :  { %v3525_v48 = vcombine.low %v3516_v44, %v3524_v31  ;;  %v3124_v50 = vpack.c.bf16 %v3120_v32, %v3120_v32  ;;  %v3121_v51 = vmul.f32 %v4663_v18, %v4655_v37  ;;  %v3507_v59 = vrot.slane %v3500_v56, %v4935_v39 }
 0x76d   :  { %v4665_v53 = vpop.eup %4664 }
 0x76e   :  { %v3550_v21 = vsel %vm1041_vm3, %v3124_v50, 0  ;;  %v3532_v15 = vrot.slane %v3525_v48, %v4935_v39  ;;  %v3125_v12 = vpack.c.bf16 %v3121_v51, %v3121_v51  ;;  %v3122_v45 = vmul.f32 %v4665_v53, %v4657_v13 }
 0x76f   :  { %v4667_v60 = vpop.eup %4666  ;;  %4541 = vmatpush3.bf16.xpose.msra.mxu1 %v3550_v21  ;;  %v3537_v62 = vshrl.u32 %v3507_v59, 16  ;;  %v3508_v9 = vcombine.high %v3507_v59, %v4775_v38 }
 0x770   :  { %4552 = vmatprep.subr.bf16.mxu1 %v4768_v0  ;;  %v3596_v61 = vsel %vm1041_vm3, %v3125_v12, 0  ;;  %v3123_v4 = vmul.f32 %v4667_v60, %v4659_v3  ;;  %v3126_v36 = vpack.c.bf16 %v3122_v45, %v3122_v45  ;;  %v3538_v6 = vshrl.u32 %v3532_v15, 16 }
 0x771   :  { %4547 = vmatpush3.bf16.xpose.msra.mxu0 %v3596_v61  ;;  %v3536_v54 = vpack.i.b16 %v3532_v15, %v3507_v59  ;;  %v3533_v25 = vcombine.high %v3532_v15, %v4775_v38  ;;  %v3543_v11 = vshrl.u32 %v3508_v9, 16 }
 0x772   :  { %4558 = vmatprep.subr.bf16.mxu0 %v4768_v0  ;;  %v3127_v63 = vpack.c.bf16 %v3123_v4, %v3123_v4  ;;  %v3642_v1 = vsel %vm1041_vm3, %v3126_v36, 0  ;;  %v3539_v5 = vpack.i.b16 %v3538_v6, %v3537_v62 }
 0x773   :  { %v3544_v49 = vshrl.u32 %v3533_v25, 16  ;;  %v3542_v37 = vpack.i.b16 %v3533_v25, %v3508_v9 }
 0x774   :  { %v3688_v10 = vsel %vm1041_vm3, %v3127_v63, 0 }
 0x775   :  { %v3545_v13 = vpack.i.b16 %v3544_v49, %v3543_v11 }
 0x776   :  { %4543 = vmatmul.mubr.msk.bf16.vlgmr.msra.gmra.mxu1 %vm1041_vm3, %v3536_v54 }
 0x777   :  { %4553 = vmatpush3.bf16.xpose.msra.mxu1 %v3642_v1  ;;  %4554 = vmatprep.mubr.msk.bf16.mxu1 %vm4769_vm0, %v4768_v0 }
 0x778   :  { %4564 = vmatprep.subr.bf16.mxu1 %v4768_v0  ;;  %4549 = vmatmul.mubr.msk.bf16.vlgmr.msra.gmra.mxu0 %vm1041_vm3, %v3539_v5 }
 0x779   :  { %4559 = vmatpush3.bf16.xpose.msra.mxu0 %v3688_v10  ;;  %4560 = vmatprep.mubr.msk.bf16.mxu0 %vm4769_vm0, %v4768_v0 }
 0x77a   :  { %4572 = vmatprep.subr.bf16.mxu0 %v4768_v0 }
 0x77e   :  { %4555 = vmatmul.mubr.msk.bf16.vlgmr.msra.gmra.mxu1 %vm1041_vm3, %v3542_v37 }
 0x77f   :  { %4568 = vmatprep.mubr.msk.bf16.mxu1 %vm4769_vm0, %v4768_v0 }
 0x780   :  { %4561 = vmatmul.mubr.msk.bf16.vlgmr.msra.gmra.mxu0 %vm1041_vm3, %v3545_v13 }
 0x781   :  { %4576 = vmatprep.mubr.msk.bf16.mxu0 %vm4769_vm0, %v4768_v0 }
 0x785   :  { %v1925_v38 = vpop.trf.xlu0 }
 0x789   :  { %v1893_v14 = vpop.trf.xlu1  ;;  %v1957_v3 = vpop.trf.xlu0 }
 0x78a   :  { %v2005_v19 = vcombine.low %v1893_v14, %v1957_v3  ;;  %v2006_v22 = vcombine.high %v1893_v14, %v1957_v3 }
 0x78c   :  { %v2013_v34 = vrot.slane %v2005_v19, %v4933_v33  ;;  %v2020_v35 = vrot.slane %v2006_v22, %v4933_v33 }
 0x78d   :  { %v1989_v17 = vpop.trf.xlu1 }
 0x78e   :  { %v2021_v8 = vcombine.low %v1925_v38, %v1989_v17  ;;  %v2022_v40 = vcombine.high %v1925_v38, %v1989_v17 }
 0x790   :  { %v2029_v41 = vrot.slane %v2021_v8, %v4933_v33  ;;  %v2036_v42 = vrot.slane %v2022_v40, %v4933_v33 }
 0x792   :  { %v2037_v43 = vcombine.low %v2013_v34, %v2029_v41  ;;  %v2038_v52 = vcombine.high %v2013_v34, %v2029_v41  ;;  %v2053_v46 = vcombine.low %v2020_v35, %v2036_v42  ;;  %v2054_v55 = vcombine.high %v2020_v35, %v2036_v42 }
 0x794   :  { %v2045_v24 = vrot.slane %v2037_v43, %v4935_v39  ;;  %v2052_v26 = vrot.slane %v2038_v52, %v4935_v39  ;;  %v2061_v58 = vrot.slane %v2053_v46, %v4935_v39  ;;  %v2068_v27 = vrot.slane %v2054_v55, %v4935_v39  ;;  %v4628_v46 = vld [vmem:[%s5490_s7 + $0x8] sm:$0xff]  }
 0x795   :  { %4565 = vmatpush3.bf16.msra.mxu1 %v4628_v46 }
 0x796   :  { %v2073_v2 = vcombine.low %v2045_v24, %v2052_v26  ;;  %v4358_v23 = vcombine.high %v2045_v24, %v2052_v26  ;;  %v2089_v16 = vcombine.low %v2061_v58, %v2068_v27  ;;  %v4359_v29 = vcombine.high %v2061_v58, %v2068_v27  ;;  %4566 = vmatprep.subr.bf16.mxu1 %v4768_v0 }
 0x798   :  { %v2080_v18 = vrot.slane %v2073_v2, %v4933_v33  ;;  %v2088_v47 = vrot.slane %v4358_v23, %v4933_v33  ;;  %v2096_v48 = vrot.slane %v2089_v16, %v4933_v33  ;;  %v2104_v50 = vrot.slane %v4359_v29, %v4933_v33 }
 0x79a   :  { %v2105_v60 = vcombine.low %v2080_v18, %v2088_v47  ;;  %v2121_v15 = vcombine.low %v2096_v48, %v2104_v50  ;;  %v2106_v34 = vcombine.high %v2080_v18, %v2088_v47  ;;  %v2122_v35 = vcombine.high %v2096_v48, %v2104_v50 }
 0x79c   :  { %v5377_v59 = vrot.slane %v2105_v60, %v4935_v39  ;;  %v5380_v61 = vrot.slane %v2121_v15, %v4935_v39  ;;  %v2120_v58 = vrot.slane %v2106_v34, %v4935_v39  ;;  %v2136_v27 = vrot.slane %v2122_v35, %v4935_v39 }
 0x79e   :  { %v2137_v36 = vcombine.low %v5377_v59, %v5380_v61 }
 0x836   :  { %v3586_v57 = vpop.f32.mrf.mxu1 }
 0x837   :  { %3730 = vxpose.xlu0.b32.start.end [1/1] (short) (narrow) %v3586_v57, 8 }
 0x838   :  { %v4544_v7 = vpop.f32.mrf.mxu1  ;;  %v3632_v20 = vpop.f32.mrf.mxu0 }
 0x839   :  { %3762 = vxpose.xlu1.b32.start.end [1/1] (short) (narrow) %v3632_v20, 8 }
 0x83a   :  { %v3589_v28 = vpop.f32.mrf.mxu1  ;;  %v4550_v30 = vpop.f32.mrf.mxu0 }
 0x83c   :  { %v4545_v44 = vpop.f32.mrf.mxu1  ;;  %v3635_v31 = vpop.f32.mrf.mxu0 }
 0x83d   :  { %v2139_v44 = vcombine.low %v2120_v58, %v2136_v27 }
 0x83e   :  { %v3678_v32 = vpop.f32.mrf.mxu1  ;;  %v4551_v51 = vpop.f32.mrf.mxu0 }
 0x83f   :  { %3794 = vxpose.xlu0.b32.start.end [1/1] (short) (narrow) %v3678_v32, 8  ;;  %v2138_v32 = vcombine.high %v5377_v59, %v5380_v61  ;;  %v4374_v59 = vld [vmem:[#allocation7] ss:$0 sm:$0xff] }
 0x840   :  { %v4556_v53 = vpop.f32.mrf.mxu1  ;;  %v3724_v56 = vpop.f32.mrf.mxu0 }
 0x841   :  { %3826 = vxpose.xlu1.b32.start.end [1/1] (short) (narrow) %v3724_v56, 8 }
 0x842   :  { %v3681_v21 = vpop.f32.mrf.mxu1  ;;  %v4562_v12 = vpop.f32.mrf.mxu0 }
 0x844   :  { %v4557_v45 = vpop.f32.mrf.mxu1  ;;  %v3727_v4 = vpop.f32.mrf.mxu0 }
 0x846   :  { %v4563_v6 = vpop.f32.mrf.mxu0 }
 0x8b3   :  { %v3746_v54 = vpop.trf.xlu0 }
 0x8b5   :  { %v3778_v62 = vpop.trf.xlu1 }
 0x8bb   :  { %v3810_v63 = vpop.trf.xlu0 }
 0x8bc   :  { %v3858_v1 = vcombine.low %v3746_v54, %v3810_v63  ;;  %v3859_v25 = vcombine.high %v3746_v54, %v3810_v63 }
 0x8bd   :  { %v3842_v5 = vpop.trf.xlu1 }
 0x8be   :  { %v3874_v9 = vcombine.low %v3778_v62, %v3842_v5  ;;  %v3875_v10 = vcombine.high %v3778_v62, %v3842_v5  ;;  %v3866_v49 = vrot.slane %v3858_v1, %v4933_v33  ;;  %v3873_v37 = vrot.slane %v3859_v25, %v4933_v33 }
 0x8c0   :  { %v3882_v11 = vrot.slane %v3874_v9, %v4933_v33  ;;  %v3889_v13 = vrot.slane %v3875_v10, %v4933_v33 }
 0x8c2   :  { %v3890_v38 = vcombine.low %v3866_v49, %v3882_v11  ;;  %v3891_v14 = vcombine.high %v3866_v49, %v3882_v11  ;;  %v3906_v3 = vcombine.low %v3873_v37, %v3889_v13  ;;  %v3907_v17 = vcombine.high %v3873_v37, %v3889_v13  ;;  %v4676_v37 = vld [vmem:[%s5505_s20] sm:$0xff] }
 0x8c4   :  { %v3898_v19 = vrot.slane %v3890_v38, %v4935_v39  ;;  %v3905_v22 = vrot.slane %v3891_v14, %v4935_v39  ;;  %v3914_v8 = vrot.slane %v3906_v3, %v4935_v39  ;;  %v3921_v40 = vrot.slane %v3907_v17, %v4935_v39  ;;  %v4677_v17 = vld [vmem:[%s5505_s20 + $0x8] sm:$0xff] }
 0x8c6   :  { %v3926_v41 = vcombine.low %v3898_v19, %v3905_v22  ;;  %v4372_v42 = vcombine.high %v3898_v19, %v3905_v22  ;;  %v3942_v43 = vcombine.low %v3914_v8, %v3921_v40  ;;  %v4373_v52 = vcombine.high %v3914_v8, %v3921_v40 }
 0x8c8   :  { %v3933_v55 = vrot.slane %v3926_v41, %v4933_v33  ;;  %v3941_v57 = vrot.slane %v4372_v42, %v4933_v33  ;;  %v3949_v24 = vrot.slane %v3942_v43, %v4933_v33  ;;  %v3957_v26 = vrot.slane %v4373_v52, %v4933_v33  ;;  %v4629_v33 = vld [vmem:[%s5490_s7] sm:$0xff]   ;;  %s4778_s7 = smov 24  }
 0x8c9   :  { %4567 = vmatpush3.bf16.msra.mxu1 %v4629_v33 }
 0x8ca   :  { %v3959_v7 = vcombine.high %v3933_v55, %v3941_v57  ;;  %v3975_v20 = vcombine.high %v3949_v24, %v3957_v26  ;;  %v3958_v28 = vcombine.low %v3933_v55, %v3941_v57  ;;  %v3974_v2 = vcombine.low %v3949_v24, %v3957_v26  ;;  %4580 = vmatprep.subr.bf16.mxu1 %v4768_v0  ;;  %v4630_v57 = vld [vmem:[%s5492_s9 + $0x8] sm:$0xff]   ;;  %v4631_v24 = vld [vmem:[%s5492_s9] sm:$0xff]   ;;  %v4632_v26 = vld [vmem:[%s5494_s11 + $0x18] sm:$0xff]  }
 0x8cb   :  { %4573 = vmatpush3.bf16.msra.mxu0 %v4630_v57 }
 0x8cc   :  { %v3973_v23 = vrot.slane %v3959_v7, %v4935_v39  ;;  %v3989_v16 = vrot.slane %v3975_v20, %v4935_v39  ;;  %v3966_v29 = vrot.slane %v3958_v28, %v4935_v39  ;;  %v3982_v30 = vrot.slane %v3974_v2, %v4935_v39  ;;  %4574 = vmatprep.subr.bf16.mxu0 %v4768_v0 }
 0x8cd   :  { %v2140_v39 = vcombine.high %v2120_v58, %v2136_v27 }
 0x8ce   :  { %v3992_v31 = vcombine.low %v3973_v23, %v3989_v16  ;;  %v3991_v18 = vcombine.high %v3966_v29, %v3982_v30  ;;  %v3990_v47 = vcombine.low %v3966_v29, %v3982_v30  ;;  %v3993_v51 = vcombine.high %v3973_v23, %v3989_v16  ;;  %v4378_v29 = vld [vmem:[%s5496_s13] ss:$0 sm:$0xff] }
 0x8cf   :  { %4575 = vmatpush3.bf16.msra.mxu0 %v4631_v24 }
 0x8d0   :  { %v4612_v48 = vpack.i.bf16 %v3992_v31, %v2139_v44  ;;  %v4607_v50 = vpack.i.bf16 %v3991_v18, %v2138_v32  ;;  %v4617_v53 = vpack.i.bf16 %v3993_v51, %v2140_v39  ;;  %v4379_v31 = vld [vmem:[%s5497_s14] ss:$0 sm:$0xff]  ;;  %v4634_v51 = vld [vmem:[%s5494_s11 + $0x8] sm:$0xff]  }
 0x8d1   :  { %v4635_v39 = vld [vmem:[%s5494_s11] sm:$0xff]  }
 0x8d2   :  { %4613 = vrot.lane.b32.xlu1 %v4612_v48, %s4776_s19  ;;  %4608 = vrot.lane.b32.xlu0 %v4607_v50, %s4777_s1  ;;  %v4633_v50 = vld [vmem:[%s5494_s11 + $0x10] sm:$0xff]  }
 0x8d6   :  { %4618 = vrot.lane.b32.xlu1 %v4617_v53, %s4778_s7  ;;  %v4380_v53 = vld [vmem:[%s5493_s10] ss:$0 sm:$0xff] }
 0x944   :  { %v4614_v56 = vpop.permute.xlu1 %4613  ;;  %v4609_v21 = vpop.permute.xlu0 %4608 }
 0x945   :  { %v4611_v60 = vunpack.i.h.bf16 %v4609_v21  ;;  %v4610_v15 = vunpack.i.l.bf16 %v4609_v21  ;;  %v4616_v12 = vunpack.i.h.bf16 %v4614_v56  ;;  %v4615_v45 = vunpack.i.l.bf16 %v4614_v56 }
 0x947   :  { %v2153_v4 = vsel %vm1041_vm3, %v2137_v36, %v4610_v15  ;;  %v4006_v6 = vsel %vm1041_vm3, %v3990_v47, %v4611_v60 }
 0x948   :  { %v4619_v54 = vpop.permute.xlu1 %4618  ;;  %v2155_v1 = vsel %vm2154_vm4, %v2153_v4, %v4615_v45  ;;  %v4007_v25 = vsel %vm2154_vm4, %v4006_v6, %v4616_v12 }
 0x949   :  { %v4621_v62 = vunpack.i.h.bf16 %v4619_v54  ;;  %v4620_v63 = vunpack.i.l.bf16 %v4619_v54 }
 0x94b   :  { %v2157_v5 = vsel %vm2156_vm5, %v2155_v1, %v4620_v63  ;;  %v4008_v9 = vsel %vm2156_vm5, %v4007_v25, %v4621_v62 }
 0x94c   :  { %v4009_v10 = vpack.c.bf16 %v4008_v9, %v2157_v5 }
 0x94e   :  { %4569 = vmatmul.mubr.msk.bf16.vlgmr.msra.gmra.mxu1 %vm130_vm1, %v4009_v10 }
 0x94f   :  { %4588 = vmatprep.mubr.msk.bf16.mxu1 %vm4769_vm0, %v4768_v0  ;;  %4581 = vmatpush3.bf16.msra.mxu1 %v4632_v26 }
 0x950   :  { %4582 = vmatprep.subr.bf16.mxu1 %v4768_v0 }
 0x953   :  { %4583 = vmatpush3.bf16.msra.mxu1 %v4633_v50 }
 0x954   :  { %4584 = vmatprep.subr.bf16.mxu1 %v4768_v0 }
 0x957   :  { %4585 = vmatpush3.bf16.msra.mxu1 %v4634_v51 }
 0x958   :  { %4586 = vmatprep.subr.bf16.mxu1 %v4768_v0  ;;  %v4384_v0 = vld [vmem:[%s5495_s12] ss:$0 sm:$0xff] }
 0x95b   :  { %4587 = vmatpush3.bf16.msra.mxu1 %v4635_v39 }
 0xa0e   :  { %v4070_v61 = vpop.f32.mrf.mxu1 }
 0xa0f   :  { %v4071_v36 = vadd.f32 %v4374_v59, %v4070_v61 }
 0xa10   :  { %v4570_v49 = vpop.f32.mrf.mxu1 }
 0xa11   :  { %v4077_v11 = vadd.f32 %v4676_v37, %v4071_v36 }
 0xa12   :  { %v4073_v13 = vpop.f32.mrf.mxu1 }
 0xa13   :  { %v4074_v38 = vadd.f32 %v4374_v59, %v4073_v13  ;;  %v4081_v14 = vsel %vm130_vm1, %v4077_v11, 0.0 }
 0xa14   :  { %4082 = vadd.xlane.f32.xlu1 %v4081_v14  ;;  %v4571_v3 = vpop.f32.mrf.mxu1 }
 0xa15   :  { %v4078_v19 = vadd.f32 %v4677_v17, %v4074_v38 }
 0xa17   :  { %v4084_v22 = vsel %vm130_vm1, %v4078_v19, 0.0 }
 0xa18   :  { %4085 = vadd.xlane.f32.xlu0 %v4084_v22 }
 0xa9d   :  { %v4083_v8 = vpop.xlane.xlu1 %4082 }
 0xa9e   :  { %v4088_v40 = vmul.f32 0.03125, %v4083_v8 }
 0xaa0   :  { %v4090_v34 = vsub.f32 %v4077_v11, %v4088_v40 }
 0xaa1   :  { %v4086_v35 = vpop.xlane.xlu0 %4085 }
 0xaa2   :  { %v4089_v41 = vmul.f32 0.03125, %v4086_v35  ;;  %v4092_v42 = vmul.f32 %v4090_v34, %v4090_v34 }
 0xaa4   :  { %v4091_v43 = vsub.f32 %v4078_v19, %v4089_v41  ;;  %v4094_v52 = vsel %vm130_vm1, %v4092_v42, 0.0 }
 0xaa5   :  { %4095 = vadd.xlane.f32.xlu0 %v4094_v52  ;;  %v4390_v52 = vld [vmem:[%s5498_s15] ss:$0 sm:$0xff] }
 0xaa6   :  { %v4093_v46 = vmul.f32 %v4091_v43, %v4091_v43 }
 0xaa8   :  { %v4097_v55 = vsel %vm130_vm1, %v4093_v46, 0.0 }
 0xaa9   :  { %4098 = vadd.xlane.f32.xlu1 %v4097_v55  ;;  %v4391_v55 = vld [vmem:[%s5499_s16] ss:$0 sm:$0xff] }
 0xb2e   :  { %v4096_v58 = vpop.xlane.xlu0 %4095 }
 0xb2f   :  { %v4100_v27 = vmul.f32 0.03125, %v4096_v58 }
 0xb31   :  { %v4102_v7 = vadd.f32 1e-05, %v4100_v27 }
 0xb32   :  { %v4099_v20 = vpop.xlane.xlu1 %4098 }
 0xb33   :  { %4668 = vrsqrt.f32 %v4102_v7  ;;  %v4101_v28 = vmul.f32 0.03125, %v4099_v20 }
 0xb35   :  { %v4103_v2 = vadd.f32 1e-05, %v4101_v28 }
 0xb37   :  { %4670 = vrsqrt.f32 %v4103_v2 }
 0xb40   :  { %v4669_v23 = vpop.eup %4668 }
 0xb41   :  { %v4106_v16 = vmul.f32 %v4669_v23, %v4090_v34 }
 0xb43   :  { %v4114_v44 = vmul.f32 %v4378_v29, %v4106_v16 }
 0xb44   :  { %v4671_v30 = vpop.eup %4670 }
 0xb45   :  { %v4107_v33 = vmul.f32 %v4671_v30, %v4091_v43  ;;  %v4122_v18 = vadd.f32 %v4379_v31, %v4114_v44 }
 0xb47   :  { %v4115_v32 = vmul.f32 %v4378_v29, %v4107_v33 }
 0xb49   :  { %v4123_v47 = vadd.f32 %v4379_v31, %v4115_v32 }
 0xb4b   :  { %v4124_v48 = vpack.c.bf16 %v4123_v47, %v4122_v18 }
 0xb4d   :  { %4577 = vmatmul.mubr.msk.bf16.vlgmr.msra.gmra.mxu0 %vm130_vm1, %v4124_v48 }
 0xc0d   :  { %v4185_v56 = vpop.f32.mrf.mxu0 }
 0xc0e   :  { %v4186_v60 = vadd.f32 %v4380_v53, %v4185_v56 }
 0xc0f   :  { %v4578_v21 = vpop.f32.mrf.mxu0 }
 0xc10   :  { %v4192_v4 = vmax.f32 %v4186_v60, 0.0 }
 0xc11   :  { %v4188_v15 = vpop.f32.mrf.mxu0 }
 0xc12   :  { %v4189_v12 = vadd.f32 %v4380_v53, %v4188_v15 }
 0xc13   :  { %v4579_v45 = vpop.f32.mrf.mxu0 }
 0xc14   :  { %v4193_v6 = vmax.f32 %v4189_v12, 0.0 }
 0xc16   :  { %v4194_v54 = vpack.c.bf16 %v4193_v6, %v4192_v4 }
 0xc18   :  { %4589 = vmatmul.mubr.msk.bf16.vlgmr.msra.gmra.mxu1 %vm4234_vm6, %v4194_v54 }
 0xcd8   :  { %v4272_v62 = vpop.f32.mrf.mxu1 }
 0xcd9   :  { %v4273_v63 = vadd.f32 %v4384_v0, %v4272_v62 }
 0xcda   :  { %v4590_v1 = vpop.f32.mrf.mxu1 }
 0xcdb   :  { %v4279_v25 = vadd.f32 %v4273_v63, %v4122_v18 }
 0xcdc   :  { %v4275_v5 = vpop.f32.mrf.mxu1 }
 0xcdd   :  { %v4276_v9 = vadd.f32 %v4384_v0, %v4275_v5  ;;  %v4283_v10 = vsel %vm130_vm1, %v4279_v25, 0.0 }
 0xcde   :  { %4284 = vadd.xlane.f32.xlu0 %v4283_v10  ;;  %v4591_v59 = vpop.f32.mrf.mxu1 }
 0xcdf   :  { %v4280_v61 = vadd.f32 %v4276_v9, %v4123_v47 }
 0xce1   :  { %v4286_v36 = vsel %vm130_vm1, %v4280_v61, 0.0 }
 0xce2   :  { %4287 = vadd.xlane.f32.xlu1 %v4286_v36 }
 0xd67   :  { %v4285_v49 = vpop.xlane.xlu0 %4284 }
 0xd68   :  { %v4289_v37 = vmul.f32 0.03125, %v4285_v49 }
 0xd6a   :  { %v4291_v11 = vsub.f32 %v4279_v25, %v4289_v37 }
 0xd6b   :  { %v4288_v13 = vpop.xlane.xlu1 %4287 }
 0xd6c   :  { %v4290_v38 = vmul.f32 0.03125, %v4288_v13  ;;  %v4293_v14 = vmul.f32 %v4291_v11, %v4291_v11 }
 0xd6e   :  { %v4292_v3 = vsub.f32 %v4280_v61, %v4290_v38  ;;  %v4295_v17 = vsel %vm130_vm1, %v4293_v14, 0.0 }
 0xd6f   :  { %4296 = vadd.xlane.f32.xlu0 %v4295_v17 }
 0xd70   :  { %v4294_v19 = vmul.f32 %v4292_v3, %v4292_v3 }
 0xd72   :  { %v4298_v22 = vsel %vm130_vm1, %v4294_v19, 0.0 }
 0xd73   :  { %4299 = vadd.xlane.f32.xlu1 %v4298_v22 }
 0xdf8   :  { %v4297_v8 = vpop.xlane.xlu0 %4296 }
 0xdf9   :  { %v4301_v40 = vmul.f32 0.03125, %v4297_v8 }
 0xdfb   :  { %v4303_v34 = vadd.f32 1e-05, %v4301_v40 }
 0xdfc   :  { %v4300_v35 = vpop.xlane.xlu1 %4299 }
 0xdfd   :  { %4672 = vrsqrt.f32 %v4303_v34  ;;  %v4302_v41 = vmul.f32 0.03125, %v4300_v35 }
 0xdff   :  { %v4304_v42 = vadd.f32 1e-05, %v4302_v41 }
 0xe01   :  { %4674 = vrsqrt.f32 %v4304_v42 }
 0xe0a   :  { %v4673_v43 = vpop.eup %4672 }
 0xe0b   :  { %v4307_v46 = vmul.f32 %v4673_v43, %v4291_v11 }
 0xe0d   :  { %v4315_v57 = vmul.f32 %v4390_v52, %v4307_v46 }
 0xe0e   :  { %v4675_v24 = vpop.eup %4674 }
 0xe0f   :  { %v4323_v26 = vadd.f32 %v4391_v55, %v4315_v57  ;;  %v4308_v58 = vmul.f32 %v4675_v24, %v4292_v3 }
 0xe11   :  { %4325 = vst.msk [vmem:[%s5500_s17] sm:$0xff] %vm130_vm1, %v4323_v26  ;;  %v4316_v27 = vmul.f32 %v4390_v52, %v4308_v58 }
 0xe13   :  { %v4324_v7 = vadd.f32 %v4391_v55, %v4316_v27 }
 0xe15   :  { %4326 = vst.msk [vmem:[%s5500_s17 + $0x8] sm:$0xff] %vm130_vm1, %v4324_v7 }
 0xe16   :  { %4331 = vsyncpa [#allocation3], 1 }
 0xe17   :  { %4332 = vsyncpa [#allocation5], 1 }
 0xe18   :  { %4333 = vsyncpa [#allocation8], 1 }

</bundles_post_ra>
